<compile_context>
chip_gen: v5e
topology: v5e:2x2
jax: 0.10.0
libtpu: 0.0.40
codegen_flags: <defaults>
</compile_context>

<pallas_src>
import jax
import jax.numpy as jnp
from jax.experimental import pallas as pl
from jax.experimental.pallas import tpu as pltpu


def _lstm_mlp_kernel(x_ref,                        # (T, BB, D)
                     wih1_ref, whh1_ref, b1_ref,   # (D,4H), (H,4H), (1,4H)
                     wih2_ref, whh2_ref, b2_ref,   # (H,4H), (H,4H), (1,4H)
                     wfc1_ref, bfc1_ref,           # (H,U),  (1,U)
                     wfc2_ref, bfc2_ref,           # (U,U2), (1,U2)
                     wfc3_ref, bfc3_ref,           # (1,U2), (1,1)
                     out_ref):                     # (BB, 128) lane-dense, col 0 used
    T, B, D = x_ref.shape
    H = whh1_ref.shape[0]
    G = 4 * H

    # ---- Hoisted layer-1 input projection (one MXU matmul, bias folded) ----
    x_flat = x_ref[...].reshape(T * B, D)
    xproj = (jnp.dot(x_flat, wih1_ref[...], preferred_element_type=jnp.float32)
             + b1_ref[...]).reshape(T, B, G)

    # ---- Loop-invariant values (hoisted) ----
    # Recurrent weights in bf16: single-pass MXU on all generations.
    whh1 = whh1_ref[...].astype(jnp.bfloat16)                # (H, 4H)
    wih2 = wih2_ref[...].astype(jnp.bfloat16)                # (H, 4H)
    whh2 = whh2_ref[...].astype(jnp.bfloat16)                # (H, 4H)
    b2 = jnp.broadcast_to(b2_ref[...], (B, G))               # broadcast once
    lane = jax.lax.broadcasted_iota(jnp.int32, (B, G), 1)
    g_mask = (lane >= 2 * H) & (lane < 3 * H)                # g-gate lane region

    def gates_to_hc(gates, c):
        # PyTorch gate order: i, f, g, o.
        # Single EUP call for all gates: sigmoid(x) = 0.5*(1 + tanh(x/2))
        # (exact identity), g-gate keeps plain tanh.  Pre/post scaling are
        # cheap VPU ops riding in free VALU slots.
        pre = jnp.where(g_mask, gates, gates * 0.5)
        t = jnp.tanh(pre)
        act = jnp.where(g_mask, t, 0.5 * t + 0.5)
        i = act[:, 0:H]
        f = act[:, H:2 * H]
        g = act[:, 2 * H:3 * H]
        o = act[:, 3 * H:4 * H]
        c_new = f * c + i * g
        h_new = o * jnp.tanh(c_new)
        return h_new, c_new

    h1 = c1 = h2 = c2 = jnp.zeros((B, H), jnp.float32)
    # T is small and static: full compile-time unroll, static xproj slices
    # (no scratch round-trip).
    for t in range(T):
        # Layer-2 recurrent matmul depends only on the PREVIOUS step's h2, so
        # the scheduler can overlap it with the layer-1 update.
        g2_rec = jnp.dot(h2.astype(jnp.bfloat16), whh2,
                         preferred_element_type=jnp.float32)
        # Layer 1: input projection already hoisted; only the recurrent matmul.
        gates1 = xproj[t] + jnp.dot(h1.astype(jnp.bfloat16), whh1,
                                    preferred_element_type=jnp.float32)
        h1, c1 = gates_to_hc(gates1, c1)
        # dropout1: identity (eval mode)
        gates2 = g2_rec + jnp.dot(h1.astype(jnp.bfloat16), wih2,
                                  preferred_element_type=jnp.float32) + b2
        h2, c2 = gates_to_hc(gates2, c2)
        # dropout2: identity (eval mode)

    # ---- MLP head on lstm2 output at the last time step (x[:, -1, :]) ----
    y = jnp.dot(h2, wfc1_ref[...], preferred_element_type=jnp.float32) + bfc1_ref[...]
    y = jnp.maximum(y, 0.0)
    y = jnp.dot(y, wfc2_ref[...], preferred_element_type=jnp.float32) + bfc2_ref[...]
    y = jnp.maximum(y, 0.0)
    # fc3 (U2 -> 1) as a VPU multiply + lane reduce (skip a tiny MXU pass).
    y3 = jnp.sum(y * wfc3_ref[...], axis=-1, keepdims=True) + bfc3_ref[...]
    out_ref[...] = jnp.broadcast_to(y3, out_ref.shape)       # lane-dense store


def lstm_model_forward(x, params):
    """x: (B, T, D) batch_first, float32. Returns (B, 1)."""
    B, T, D = x.shape
    H = params["whh1"].shape[1]
    U = params["wfc1"].shape[0]
    U2 = params["wfc2"].shape[0]
    G = 4 * H

    # Pad batch to the native 8-sublane tile so no VPU/EUP op is sublane-masked.
    B_pad = ((B + 7) // 8) * 8
    x_tbd = jnp.transpose(x, (1, 0, 2))                      # (T, B, D)
    if B_pad != B:
        x_tbd = jnp.pad(x_tbd, ((0, 0), (0, B_pad - B), (0, 0)))

    # Batch grid: one block per TensorCore on v7x ("parallel"); a single block
    # (grid of 1) for tiny batches / 1-TC chips, where it is a no-op loop.
    if B_pad >= 16 and B_pad % 16 == 0:
        n_blocks, BB = 2, B_pad // 2
    else:
        n_blocks, BB = 1, B_pad

    args = (
        x_tbd,
        params["wih1"].T,                                    # (D, 4H)
        params["whh1"].T,                                    # (H, 4H)
        (params["bih1"] + params["bhh1"])[None, :],          # (1, 4H)
        params["wih2"].T,                                    # (H, 4H)
        params["whh2"].T,                                    # (H, 4H)
        (params["bih2"] + params["bhh2"])[None, :],          # (1, 4H)
        params["wfc1"].T, params["bfc1"][None, :],           # (H, U), (1, U)
        params["wfc2"].T, params["bfc2"][None, :],           # (U, U2), (1, U2)
        params["wfc3"], params["bfc3"][None, :],             # (1, U2), (1, 1)
    )

    def full(shape):  # whole-array block, independent of the batch grid index
        return pl.BlockSpec(shape, lambda b: tuple(0 for _ in shape))

    in_specs = [
        pl.BlockSpec((T, BB, D), lambda b: (0, b, 0)),       # x: batch-blocked
        full((D, G)), full((H, G)), full((1, G)),
        full((H, G)), full((H, G)), full((1, G)),
        full((H, U)), full((1, U)),
        full((U, U2)), full((1, U2)),
        full((1, U2)), full((1, 1)),
    ]

    out_padded = pl.pallas_call(
        _lstm_mlp_kernel,
        out_shape=jax.ShapeDtypeStruct((B_pad, 128), jnp.float32),
        grid=(n_blocks,),
        in_specs=in_specs,
        out_specs=pl.BlockSpec((BB, 128), lambda b: (b, 0)),
        compiler_params=pltpu.CompilerParams(
            dimension_semantics=("parallel",)),
    )(*args)
    return out_padded[:B, :1]


def _reference_forward(x, params):
    """Pure-JAX f32 reference mirroring torch semantics (eval mode)."""
    B, T, D = x.shape
    H = params["whh1"].shape[1]

    def cell(x_t, h, c, wih, whh, b):
        g = x_t @ wih.T + h @ whh.T + b
        i = jax.nn.sigmoid(g[:, 0:H])
        f = jax.nn.sigmoid(g[:, H:2 * H])
        gg = jnp.tanh(g[:, 2 * H:3 * H])
        o = jax.nn.sigmoid(g[:, 3 * H:4 * H])
        c = f * c + i * gg
        return o * jnp.tanh(c), c

    h1 = c1 = h2 = c2 = jnp.zeros((B, H), jnp.float32)
    for t in range(T):
        h1, c1 = cell(x[:, t, :], h1, c1, params["wih1"], params["whh1"],
                      params["bih1"] + params["bhh1"])
        h2, c2 = cell(h1, h2, c2, params["wih2"], params["whh2"],
                      params["bih2"] + params["bhh2"])
    y = jnp.maximum(h2 @ params["wfc1"].T + params["bfc1"], 0.0)
    y = jnp.maximum(y @ params["wfc2"].T + params["bfc2"], 0.0)
    return y @ params["wfc3"].T + params["bfc3"]


def _init_params(key, input_dim, lstm_units, dense_units):
    """Deterministic init matching the nn.Module parameter shapes."""
    H, U = lstm_units, dense_units
    names_shapes = [
        ("wih1", (4 * H, input_dim)), ("whh1", (4 * H, H)),
        ("bih1", (4 * H,)), ("bhh1", (4 * H,)),
        ("wih2", (4 * H, H)), ("whh2", (4 * H, H)),
        ("bih2", (4 * H,)), ("bhh2", (4 * H,)),
        ("wfc1", (U, H)), ("bfc1", (U,)),
        ("wfc2", (U // 2, U)), ("bfc2", (U // 2,)),
        ("wfc3", (1, U // 2)), ("bfc3", (1,)),
    ]
    params = {}
    keys = jax.random.split(key, len(names_shapes))
    bound = 1.0 / jnp.sqrt(jnp.float32(H))
    for (name, shape), k in zip(names_shapes, keys):
        params[name] = jax.random.uniform(
            k, shape, jnp.float32, minval=-bound, maxval=bound)
    return params


if __name__ == "__main__":
    # Small shapes implied by the module: (batch, seq, input_dim)
    B, T, D = 4, 8, 8
    LSTM_UNITS, DENSE_UNITS = 32, 16

    key = jax.random.PRNGKey(0)
    kx, kp = jax.random.split(key)
    x = jax.random.normal(kx, (B, T, D), jnp.float32)
    params = _init_params(kp, D, LSTM_UNITS, DENSE_UNITS)

    out = jax.block_until_ready(lstm_model_forward(x, params))
    ref = jax.block_until_ready(_reference_forward(x, params))

    assert out.shape == (B, 1), out.shape
    # Tolerance relaxed vs. the f32 reference: the per-step recurrent matmuls
    # run in bf16 (f32 accumulation) inside the kernel.
    assert jnp.allclose(out, ref, atol=2e-2, rtol=2e-2), (out, ref)
    print("KERNEL_OK")
</pallas_src>

<mosaic_0001>
module attributes {stable_mosaic.version = 11 : i64} {
  func.func @_lstm_mlp_kernel(%arg0: i32, %arg1: memref<8x8x8xf32, #tpu.memory_space<vmem>>, %arg2: memref<8x128xf32, #tpu.memory_space<vmem>>, %arg3: memref<32x128xf32, #tpu.memory_space<vmem>>, %arg4: memref<1x128xf32, #tpu.memory_space<vmem>>, %arg5: memref<32x128xf32, #tpu.memory_space<vmem>>, %arg6: memref<32x128xf32, #tpu.memory_space<vmem>>, %arg7: memref<1x128xf32, #tpu.memory_space<vmem>>, %arg8: memref<32x16xf32, #tpu.memory_space<vmem>>, %arg9: memref<1x16xf32, #tpu.memory_space<vmem>>, %arg10: memref<16x8xf32, #tpu.memory_space<vmem>>, %arg11: memref<1x8xf32, #tpu.memory_space<vmem>>, %arg12: memref<1x8xf32, #tpu.memory_space<vmem>>, %arg13: memref<1x1xf32, #tpu.memory_space<vmem>>, %arg14: memref<8x128xf32, #tpu.memory_space<vmem>>) attributes {dimension_semantics = [#tpu.dimension_semantics<parallel>], iteration_bounds = array<i64: 1>, scalar_prefetch = 0 : i64, scratch_operands = 0 : i64, tpu.core_type = #tpu.core_type<tc>, window_params = [{transform_indices = @transform_0, window_bounds = array<i64: 8, 8, 8>}, {pipeline_mode = #tpu.pipeline_mode<synchronous>, transform_indices = @transform_1, window_bounds = array<i64: 8, 128>}, {pipeline_mode = #tpu.pipeline_mode<synchronous>, transform_indices = @transform_2, window_bounds = array<i64: 32, 128>}, {pipeline_mode = #tpu.pipeline_mode<synchronous>, transform_indices = @transform_3, window_bounds = array<i64: 1, 128>}, {pipeline_mode = #tpu.pipeline_mode<synchronous>, transform_indices = @transform_4, window_bounds = array<i64: 32, 128>}, {pipeline_mode = #tpu.pipeline_mode<synchronous>, transform_indices = @transform_5, window_bounds = array<i64: 32, 128>}, {pipeline_mode = #tpu.pipeline_mode<synchronous>, transform_indices = @transform_6, window_bounds = array<i64: 1, 128>}, {pipeline_mode = #tpu.pipeline_mode<synchronous>, transform_indices = @transform_7, window_bounds = array<i64: 32, 16>}, {pipeline_mode = #tpu.pipeline_mode<synchronous>, transform_indices = @transform_8, window_bounds = array<i64: 1, 16>}, {pipeline_mode = #tpu.pipeline_mode<synchronous>, transform_indices = @transform_9, window_bounds = array<i64: 16, 8>}, {pipeline_mode = #tpu.pipeline_mode<synchronous>, transform_indices = @transform_10, window_bounds = array<i64: 1, 8>}, {pipeline_mode = #tpu.pipeline_mode<synchronous>, transform_indices = @transform_11, window_bounds = array<i64: 1, 8>}, {pipeline_mode = #tpu.pipeline_mode<synchronous>, transform_indices = @transform_12, window_bounds = array<i64: 1, 1>}, {transform_indices = @transform_13, window_bounds = array<i64: 8, 128>}]} {
    %c0 = arith.constant 0 : index
    %c0_0 = arith.constant 0 : index
    %c0_1 = arith.constant 0 : index
    %0 = vector.load %arg1[%c0, %c0_0, %c0_1] : memref<8x8x8xf32, #tpu.memory_space<vmem>>, vector<8x8x8xf32>
    %1 = vector.shape_cast %0 : vector<8x8x8xf32> to vector<64x8xf32>
    %c0_2 = arith.constant 0 : index
    %c0_3 = arith.constant 0 : index
    %2 = vector.load %arg2[%c0_2, %c0_3] : memref<8x128xf32, #tpu.memory_space<vmem>>, vector<8x128xf32>
    %cst = arith.constant dense<0.000000e+00> : vector<64x128xf32>
    %3 = tpu.matmul %1, %2, %cst {dimension_numbers = #tpu.dot_dimension_numbers<[1], [0], [0], [1], [0, 0, 1, 1], [], []>} : vector<64x8xf32>, vector<8x128xf32>, vector<64x128xf32> -> vector<64x128xf32>
    %c0_4 = arith.constant 0 : index
    %c0_5 = arith.constant 0 : index
    %4 = vector.load %arg4[%c0_4, %c0_5] : memref<1x128xf32, #tpu.memory_space<vmem>>, vector<1x128xf32>
    %5 = vector.broadcast %4 : vector<1x128xf32> to vector<64x128xf32>
    %6 = arith.addf %3, %5 : vector<64x128xf32>
    %7 = vector.shape_cast %6 : vector<64x128xf32> to vector<8x8x128xf32>
    %c0_6 = arith.constant 0 : index
    %c0_7 = arith.constant 0 : index
    %8 = vector.load %arg3[%c0_6, %c0_7] : memref<32x128xf32, #tpu.memory_space<vmem>>, vector<32x128xf32>
    %9 = arith.truncf %8 : vector<32x128xf32> to vector<32x128xbf16>
    %c0_8 = arith.constant 0 : index
    %c0_9 = arith.constant 0 : index
    %10 = vector.load %arg5[%c0_8, %c0_9] : memref<32x128xf32, #tpu.memory_space<vmem>>, vector<32x128xf32>
    %11 = arith.truncf %10 : vector<32x128xf32> to vector<32x128xbf16>
    %c0_10 = arith.constant 0 : index
    %c0_11 = arith.constant 0 : index
    %12 = vector.load %arg6[%c0_10, %c0_11] : memref<32x128xf32, #tpu.memory_space<vmem>>, vector<32x128xf32>
    %13 = arith.truncf %12 : vector<32x128xf32> to vector<32x128xbf16>
    %c0_12 = arith.constant 0 : index
    %c0_13 = arith.constant 0 : index
    %14 = vector.load %arg7[%c0_12, %c0_13] : memref<1x128xf32, #tpu.memory_space<vmem>>, vector<1x128xf32>
    %15 = vector.shape_cast %14 : vector<1x128xf32> to vector<1x128xf32>
    %16 = vector.broadcast %15 : vector<1x128xf32> to vector<8x128xf32>
    %17 = tpu.iota {dimensions = array<i32: 1>} : vector<8x128xi32>
    %c64_i32 = arith.constant 64 : i32
    %18 = vector.broadcast %c64_i32 : i32 to vector<8x128xi32>
    %19 = arith.cmpi sge, %17, %18 : vector<8x128xi32>
    %c96_i32 = arith.constant 96 : i32
    %20 = vector.broadcast %c96_i32 : i32 to vector<8x128xi32>
    %21 = arith.cmpi slt, %17, %20 : vector<8x128xi32>
    %22 = arith.andi %19, %21 : vector<8x128xi1>
    %cst_14 = arith.constant 0.000000e+00 : f32
    %23 = vector.broadcast %cst_14 : f32 to vector<8x32xf32>
    %24 = arith.truncf %23 : vector<8x32xf32> to vector<8x32xbf16>
    %cst_15 = arith.constant dense<0.000000e+00> : vector<8x128xf32>
    %25 = tpu.matmul %24, %13, %cst_15 {dimension_numbers = #tpu.dot_dimension_numbers<[1], [0], [0], [1], [0, 0, 1, 1], [], []>} : vector<8x32xbf16>, vector<32x128xbf16>, vector<8x128xf32> -> vector<8x128xf32>
    %26 = vector.extract_strided_slice %7 {offsets = [0, 0, 0], sizes = [1, 8, 128], strides = [1, 1, 1]} : vector<8x8x128xf32> to vector<1x8x128xf32>
    %27 = vector.shape_cast %26 : vector<1x8x128xf32> to vector<8x128xf32>
    %28 = arith.truncf %23 : vector<8x32xf32> to vector<8x32xbf16>
    %cst_16 = arith.constant dense<0.000000e+00> : vector<8x128xf32>
    %29 = tpu.matmul %28, %9, %cst_16 {dimension_numbers = #tpu.dot_dimension_numbers<[1], [0], [0], [1], [0, 0, 1, 1], [], []>} : vector<8x32xbf16>, vector<32x128xbf16>, vector<8x128xf32> -> vector<8x128xf32>
    %30 = arith.addf %27, %29 : vector<8x128xf32>
    %cst_17 = arith.constant 5.000000e-01 : f32
    %31 = vector.broadcast %cst_17 : f32 to vector<8x128xf32>
    %32 = arith.mulf %30, %31 : vector<8x128xf32>
    %33 = arith.select %22, %30, %32 : vector<8x128xi1>, vector<8x128xf32>
    %34 = math.tanh %33 : vector<8x128xf32>
    %cst_18 = arith.constant 5.000000e-01 : f32
    %35 = vector.broadcast %cst_18 : f32 to vector<8x128xf32>
    %36 = arith.mulf %35, %34 : vector<8x128xf32>
    %cst_19 = arith.constant 5.000000e-01 : f32
    %37 = vector.broadcast %cst_19 : f32 to vector<8x128xf32>
    %38 = arith.addf %36, %37 : vector<8x128xf32>
    %39 = arith.select %22, %34, %38 : vector<8x128xi1>, vector<8x128xf32>
    %40 = vector.extract_strided_slice %39 {offsets = [0, 0], sizes = [8, 32], strides = [1, 1]} : vector<8x128xf32> to vector<8x32xf32>
    %41 = vector.extract_strided_slice %39 {offsets = [0, 32], sizes = [8, 32], strides = [1, 1]} : vector<8x128xf32> to vector<8x32xf32>
    %42 = vector.extract_strided_slice %39 {offsets = [0, 64], sizes = [8, 32], strides = [1, 1]} : vector<8x128xf32> to vector<8x32xf32>
    %43 = vector.extract_strided_slice %39 {offsets = [0, 96], sizes = [8, 32], strides = [1, 1]} : vector<8x128xf32> to vector<8x32xf32>
    %44 = arith.mulf %41, %23 : vector<8x32xf32>
    %45 = arith.mulf %40, %42 : vector<8x32xf32>
    %46 = arith.addf %44, %45 : vector<8x32xf32>
    %47 = math.tanh %46 : vector<8x32xf32>
    %48 = arith.mulf %43, %47 : vector<8x32xf32>
    %49 = arith.truncf %48 : vector<8x32xf32> to vector<8x32xbf16>
    %cst_20 = arith.constant dense<0.000000e+00> : vector<8x128xf32>
    %50 = tpu.matmul %49, %11, %cst_20 {dimension_numbers = #tpu.dot_dimension_numbers<[1], [0], [0], [1], [0, 0, 1, 1], [], []>} : vector<8x32xbf16>, vector<32x128xbf16>, vector<8x128xf32> -> vector<8x128xf32>
    %51 = arith.addf %25, %50 : vector<8x128xf32>
    %52 = arith.addf %51, %16 : vector<8x128xf32>
    %cst_21 = arith.constant 5.000000e-01 : f32
    %53 = vector.broadcast %cst_21 : f32 to vector<8x128xf32>
    %54 = arith.mulf %52, %53 : vector<8x128xf32>
    %55 = arith.select %22, %52, %54 : vector<8x128xi1>, vector<8x128xf32>
    %56 = math.tanh %55 : vector<8x128xf32>
    %cst_22 = arith.constant 5.000000e-01 : f32
    %57 = vector.broadcast %cst_22 : f32 to vector<8x128xf32>
    %58 = arith.mulf %57, %56 : vector<8x128xf32>
    %cst_23 = arith.constant 5.000000e-01 : f32
    %59 = vector.broadcast %cst_23 : f32 to vector<8x128xf32>
    %60 = arith.addf %58, %59 : vector<8x128xf32>
    %61 = arith.select %22, %56, %60 : vector<8x128xi1>, vector<8x128xf32>
    %62 = vector.extract_strided_slice %61 {offsets = [0, 0], sizes = [8, 32], strides = [1, 1]} : vector<8x128xf32> to vector<8x32xf32>
    %63 = vector.extract_strided_slice %61 {offsets = [0, 32], sizes = [8, 32], strides = [1, 1]} : vector<8x128xf32> to vector<8x32xf32>
    %64 = vector.extract_strided_slice %61 {offsets = [0, 64], sizes = [8, 32], strides = [1, 1]} : vector<8x128xf32> to vector<8x32xf32>
    %65 = vector.extract_strided_slice %61 {offsets = [0, 96], sizes = [8, 32], strides = [1, 1]} : vector<8x128xf32> to vector<8x32xf32>
    %66 = arith.mulf %63, %23 : vector<8x32xf32>
    %67 = arith.mulf %62, %64 : vector<8x32xf32>
    %68 = arith.addf %66, %67 : vector<8x32xf32>
    %69 = math.tanh %68 : vector<8x32xf32>
    %70 = arith.mulf %65, %69 : vector<8x32xf32>
    %71 = arith.truncf %70 : vector<8x32xf32> to vector<8x32xbf16>
    %cst_24 = arith.constant dense<0.000000e+00> : vector<8x128xf32>
    %72 = tpu.matmul %71, %13, %cst_24 {dimension_numbers = #tpu.dot_dimension_numbers<[1], [0], [0], [1], [0, 0, 1, 1], [], []>} : vector<8x32xbf16>, vector<32x128xbf16>, vector<8x128xf32> -> vector<8x128xf32>
    %73 = vector.extract_strided_slice %7 {offsets = [1, 0, 0], sizes = [1, 8, 128], strides = [1, 1, 1]} : vector<8x8x128xf32> to vector<1x8x128xf32>
    %74 = vector.shape_cast %73 : vector<1x8x128xf32> to vector<8x128xf32>
    %75 = arith.truncf %48 : vector<8x32xf32> to vector<8x32xbf16>
    %cst_25 = arith.constant dense<0.000000e+00> : vector<8x128xf32>
    %76 = tpu.matmul %75, %9, %cst_25 {dimension_numbers = #tpu.dot_dimension_numbers<[1], [0], [0], [1], [0, 0, 1, 1], [], []>} : vector<8x32xbf16>, vector<32x128xbf16>, vector<8x128xf32> -> vector<8x128xf32>
    %77 = arith.addf %74, %76 : vector<8x128xf32>
    %cst_26 = arith.constant 5.000000e-01 : f32
    %78 = vector.broadcast %cst_26 : f32 to vector<8x128xf32>
    %79 = arith.mulf %77, %78 : vector<8x128xf32>
    %80 = arith.select %22, %77, %79 : vector<8x128xi1>, vector<8x128xf32>
    %81 = math.tanh %80 : vector<8x128xf32>
    %cst_27 = arith.constant 5.000000e-01 : f32
    %82 = vector.broadcast %cst_27 : f32 to vector<8x128xf32>
    %83 = arith.mulf %82, %81 : vector<8x128xf32>
    %cst_28 = arith.constant 5.000000e-01 : f32
    %84 = vector.broadcast %cst_28 : f32 to vector<8x128xf32>
    %85 = arith.addf %83, %84 : vector<8x128xf32>
    %86 = arith.select %22, %81, %85 : vector<8x128xi1>, vector<8x128xf32>
    %87 = vector.extract_strided_slice %86 {offsets = [0, 0], sizes = [8, 32], strides = [1, 1]} : vector<8x128xf32> to vector<8x32xf32>
    %88 = vector.extract_strided_slice %86 {offsets = [0, 32], sizes = [8, 32], strides = [1, 1]} : vector<8x128xf32> to vector<8x32xf32>
    %89 = vector.extract_strided_slice %86 {offsets = [0, 64], sizes = [8, 32], strides = [1, 1]} : vector<8x128xf32> to vector<8x32xf32>
    %90 = vector.extract_strided_slice %86 {offsets = [0, 96], sizes = [8, 32], strides = [1, 1]} : vector<8x128xf32> to vector<8x32xf32>
    %91 = arith.mulf %88, %46 : vector<8x32xf32>
    %92 = arith.mulf %87, %89 : vector<8x32xf32>
    %93 = arith.addf %91, %92 : vector<8x32xf32>
    %94 = math.tanh %93 : vector<8x32xf32>
    %95 = arith.mulf %90, %94 : vector<8x32xf32>
    %96 = arith.truncf %95 : vector<8x32xf32> to vector<8x32xbf16>
    %cst_29 = arith.constant dense<0.000000e+00> : vector<8x128xf32>
    %97 = tpu.matmul %96, %11, %cst_29 {dimension_numbers = #tpu.dot_dimension_numbers<[1], [0], [0], [1], [0, 0, 1, 1], [], []>} : vector<8x32xbf16>, vector<32x128xbf16>, vector<8x128xf32> -> vector<8x128xf32>
    %98 = arith.addf %72, %97 : vector<8x128xf32>
    %99 = arith.addf %98, %16 : vector<8x128xf32>
    %cst_30 = arith.constant 5.000000e-01 : f32
    %100 = vector.broadcast %cst_30 : f32 to vector<8x128xf32>
    %101 = arith.mulf %99, %100 : vector<8x128xf32>
    %102 = arith.select %22, %99, %101 : vector<8x128xi1>, vector<8x128xf32>
    %103 = math.tanh %102 : vector<8x128xf32>
    %cst_31 = arith.constant 5.000000e-01 : f32
    %104 = vector.broadcast %cst_31 : f32 to vector<8x128xf32>
    %105 = arith.mulf %104, %103 : vector<8x128xf32>
    %cst_32 = arith.constant 5.000000e-01 : f32
    %106 = vector.broadcast %cst_32 : f32 to vector<8x128xf32>
    %107 = arith.addf %105, %106 : vector<8x128xf32>
    %108 = arith.select %22, %103, %107 : vector<8x128xi1>, vector<8x128xf32>
    %109 = vector.extract_strided_slice %108 {offsets = [0, 0], sizes = [8, 32], strides = [1, 1]} : vector<8x128xf32> to vector<8x32xf32>
    %110 = vector.extract_strided_slice %108 {offsets = [0, 32], sizes = [8, 32], strides = [1, 1]} : vector<8x128xf32> to vector<8x32xf32>
    %111 = vector.extract_strided_slice %108 {offsets = [0, 64], sizes = [8, 32], strides = [1, 1]} : vector<8x128xf32> to vector<8x32xf32>
    %112 = vector.extract_strided_slice %108 {offsets = [0, 96], sizes = [8, 32], strides = [1, 1]} : vector<8x128xf32> to vector<8x32xf32>
    %113 = arith.mulf %110, %68 : vector<8x32xf32>
    %114 = arith.mulf %109, %111 : vector<8x32xf32>
    %115 = arith.addf %113, %114 : vector<8x32xf32>
    %116 = math.tanh %115 : vector<8x32xf32>
    %117 = arith.mulf %112, %116 : vector<8x32xf32>
    %118 = arith.truncf %117 : vector<8x32xf32> to vector<8x32xbf16>
    %cst_33 = arith.constant dense<0.000000e+00> : vector<8x128xf32>
    %119 = tpu.matmul %118, %13, %cst_33 {dimension_numbers = #tpu.dot_dimension_numbers<[1], [0], [0], [1], [0, 0, 1, 1], [], []>} : vector<8x32xbf16>, vector<32x128xbf16>, vector<8x128xf32> -> vector<8x128xf32>
    %120 = vector.extract_strided_slice %7 {offsets = [2, 0, 0], sizes = [1, 8, 128], strides = [1, 1, 1]} : vector<8x8x128xf32> to vector<1x8x128xf32>
    %121 = vector.shape_cast %120 : vector<1x8x128xf32> to vector<8x128xf32>
    %122 = arith.truncf %95 : vector<8x32xf32> to vector<8x32xbf16>
    %cst_34 = arith.constant dense<0.000000e+00> : vector<8x128xf32>
    %123 = tpu.matmul %122, %9, %cst_34 {dimension_numbers = #tpu.dot_dimension_numbers<[1], [0], [0], [1], [0, 0, 1, 1], [], []>} : vector<8x32xbf16>, vector<32x128xbf16>, vector<8x128xf32> -> vector<8x128xf32>
    %124 = arith.addf %121, %123 : vector<8x128xf32>
    %cst_35 = arith.constant 5.000000e-01 : f32
    %125 = vector.broadcast %cst_35 : f32 to vector<8x128xf32>
    %126 = arith.mulf %124, %125 : vector<8x128xf32>
    %127 = arith.select %22, %124, %126 : vector<8x128xi1>, vector<8x128xf32>
    %128 = math.tanh %127 : vector<8x128xf32>
    %cst_36 = arith.constant 5.000000e-01 : f32
    %129 = vector.broadcast %cst_36 : f32 to vector<8x128xf32>
    %130 = arith.mulf %129, %128 : vector<8x128xf32>
    %cst_37 = arith.constant 5.000000e-01 : f32
    %131 = vector.broadcast %cst_37 : f32 to vector<8x128xf32>
    %132 = arith.addf %130, %131 : vector<8x128xf32>
    %133 = arith.select %22, %128, %132 : vector<8x128xi1>, vector<8x128xf32>
    %134 = vector.extract_strided_slice %133 {offsets = [0, 0], sizes = [8, 32], strides = [1, 1]} : vector<8x128xf32> to vector<8x32xf32>
    %135 = vector.extract_strided_slice %133 {offsets = [0, 32], sizes = [8, 32], strides = [1, 1]} : vector<8x128xf32> to vector<8x32xf32>
    %136 = vector.extract_strided_slice %133 {offsets = [0, 64], sizes = [8, 32], strides = [1, 1]} : vector<8x128xf32> to vector<8x32xf32>
    %137 = vector.extract_strided_slice %133 {offsets = [0, 96], sizes = [8, 32], strides = [1, 1]} : vector<8x128xf32> to vector<8x32xf32>
    %138 = arith.mulf %135, %93 : vector<8x32xf32>
    %139 = arith.mulf %134, %136 : vector<8x32xf32>
    %140 = arith.addf %138, %139 : vector<8x32xf32>
    %141 = math.tanh %140 : vector<8x32xf32>
    %142 = arith.mulf %137, %141 : vector<8x32xf32>
    %143 = arith.truncf %142 : vector<8x32xf32> to vector<8x32xbf16>
    %cst_38 = arith.constant dense<0.000000e+00> : vector<8x128xf32>
    %144 = tpu.matmul %143, %11, %cst_38 {dimension_numbers = #tpu.dot_dimension_numbers<[1], [0], [0], [1], [0, 0, 1, 1], [], []>} : vector<8x32xbf16>, vector<32x128xbf16>, vector<8x128xf32> -> vector<8x128xf32>
    %145 = arith.addf %119, %144 : vector<8x128xf32>
    %146 = arith.addf %145, %16 : vector<8x128xf32>
    %cst_39 = arith.constant 5.000000e-01 : f32
    %147 = vector.broadcast %cst_39 : f32 to vector<8x128xf32>
    %148 = arith.mulf %146, %147 : vector<8x128xf32>
    %149 = arith.select %22, %146, %148 : vector<8x128xi1>, vector<8x128xf32>
    %150 = math.tanh %149 : vector<8x128xf32>
    %cst_40 = arith.constant 5.000000e-01 : f32
    %151 = vector.broadcast %cst_40 : f32 to vector<8x128xf32>
    %152 = arith.mulf %151, %150 : vector<8x128xf32>
    %cst_41 = arith.constant 5.000000e-01 : f32
    %153 = vector.broadcast %cst_41 : f32 to vector<8x128xf32>
    %154 = arith.addf %152, %153 : vector<8x128xf32>
    %155 = arith.select %22, %150, %154 : vector<8x128xi1>, vector<8x128xf32>
    %156 = vector.extract_strided_slice %155 {offsets = [0, 0], sizes = [8, 32], strides = [1, 1]} : vector<8x128xf32> to vector<8x32xf32>
    %157 = vector.extract_strided_slice %155 {offsets = [0, 32], sizes = [8, 32], strides = [1, 1]} : vector<8x128xf32> to vector<8x32xf32>
    %158 = vector.extract_strided_slice %155 {offsets = [0, 64], sizes = [8, 32], strides = [1, 1]} : vector<8x128xf32> to vector<8x32xf32>
    %159 = vector.extract_strided_slice %155 {offsets = [0, 96], sizes = [8, 32], strides = [1, 1]} : vector<8x128xf32> to vector<8x32xf32>
    %160 = arith.mulf %157, %115 : vector<8x32xf32>
    %161 = arith.mulf %156, %158 : vector<8x32xf32>
    %162 = arith.addf %160, %161 : vector<8x32xf32>
    %163 = math.tanh %162 : vector<8x32xf32>
    %164 = arith.mulf %159, %163 : vector<8x32xf32>
    %165 = arith.truncf %164 : vector<8x32xf32> to vector<8x32xbf16>
    %cst_42 = arith.constant dense<0.000000e+00> : vector<8x128xf32>
    %166 = tpu.matmul %165, %13, %cst_42 {dimension_numbers = #tpu.dot_dimension_numbers<[1], [0], [0], [1], [0, 0, 1, 1], [], []>} : vector<8x32xbf16>, vector<32x128xbf16>, vector<8x128xf32> -> vector<8x128xf32>
    %167 = vector.extract_strided_slice %7 {offsets = [3, 0, 0], sizes = [1, 8, 128], strides = [1, 1, 1]} : vector<8x8x128xf32> to vector<1x8x128xf32>
    %168 = vector.shape_cast %167 : vector<1x8x128xf32> to vector<8x128xf32>
    %169 = arith.truncf %142 : vector<8x32xf32> to vector<8x32xbf16>
    %cst_43 = arith.constant dense<0.000000e+00> : vector<8x128xf32>
    %170 = tpu.matmul %169, %9, %cst_43 {dimension_numbers = #tpu.dot_dimension_numbers<[1], [0], [0], [1], [0, 0, 1, 1], [], []>} : vector<8x32xbf16>, vector<32x128xbf16>, vector<8x128xf32> -> vector<8x128xf32>
    %171 = arith.addf %168, %170 : vector<8x128xf32>
    %cst_44 = arith.constant 5.000000e-01 : f32
    %172 = vector.broadcast %cst_44 : f32 to vector<8x128xf32>
    %173 = arith.mulf %171, %172 : vector<8x128xf32>
    %174 = arith.select %22, %171, %173 : vector<8x128xi1>, vector<8x128xf32>
    %175 = math.tanh %174 : vector<8x128xf32>
    %cst_45 = arith.constant 5.000000e-01 : f32
    %176 = vector.broadcast %cst_45 : f32 to vector<8x128xf32>
    %177 = arith.mulf %176, %175 : vector<8x128xf32>
    %cst_46 = arith.constant 5.000000e-01 : f32
    %178 = vector.broadcast %cst_46 : f32 to vector<8x128xf32>
    %179 = arith.addf %177, %178 : vector<8x128xf32>
    %180 = arith.select %22, %175, %179 : vector<8x128xi1>, vector<8x128xf32>
    %181 = vector.extract_strided_slice %180 {offsets = [0, 0], sizes = [8, 32], strides = [1, 1]} : vector<8x128xf32> to vector<8x32xf32>
    %182 = vector.extract_strided_slice %180 {offsets = [0, 32], sizes = [8, 32], strides = [1, 1]} : vector<8x128xf32> to vector<8x32xf32>
    %183 = vector.extract_strided_slice %180 {offsets = [0, 64], sizes = [8, 32], strides = [1, 1]} : vector<8x128xf32> to vector<8x32xf32>
    %184 = vector.extract_strided_slice %180 {offsets = [0, 96], sizes = [8, 32], strides = [1, 1]} : vector<8x128xf32> to vector<8x32xf32>
    %185 = arith.mulf %182, %140 : vector<8x32xf32>
    %186 = arith.mulf %181, %183 : vector<8x32xf32>
    %187 = arith.addf %185, %186 : vector<8x32xf32>
    %188 = math.tanh %187 : vector<8x32xf32>
    %189 = arith.mulf %184, %188 : vector<8x32xf32>
    %190 = arith.truncf %189 : vector<8x32xf32> to vector<8x32xbf16>
    %cst_47 = arith.constant dense<0.000000e+00> : vector<8x128xf32>
    %191 = tpu.matmul %190, %11, %cst_47 {dimension_numbers = #tpu.dot_dimension_numbers<[1], [0], [0], [1], [0, 0, 1, 1], [], []>} : vector<8x32xbf16>, vector<32x128xbf16>, vector<8x128xf32> -> vector<8x128xf32>
    %192 = arith.addf %166, %191 : vector<8x128xf32>
    %193 = arith.addf %192, %16 : vector<8x128xf32>
    %cst_48 = arith.constant 5.000000e-01 : f32
    %194 = vector.broadcast %cst_48 : f32 to vector<8x128xf32>
    %195 = arith.mulf %193, %194 : vector<8x128xf32>
    %196 = arith.select %22, %193, %195 : vector<8x128xi1>, vector<8x128xf32>
    %197 = math.tanh %196 : vector<8x128xf32>
    %cst_49 = arith.constant 5.000000e-01 : f32
    %198 = vector.broadcast %cst_49 : f32 to vector<8x128xf32>
    %199 = arith.mulf %198, %197 : vector<8x128xf32>
    %cst_50 = arith.constant 5.000000e-01 : f32
    %200 = vector.broadcast %cst_50 : f32 to vector<8x128xf32>
    %201 = arith.addf %199, %200 : vector<8x128xf32>
    %202 = arith.select %22, %197, %201 : vector<8x128xi1>, vector<8x128xf32>
    %203 = vector.extract_strided_slice %202 {offsets = [0, 0], sizes = [8, 32], strides = [1, 1]} : vector<8x128xf32> to vector<8x32xf32>
    %204 = vector.extract_strided_slice %202 {offsets = [0, 32], sizes = [8, 32], strides = [1, 1]} : vector<8x128xf32> to vector<8x32xf32>
    %205 = vector.extract_strided_slice %202 {offsets = [0, 64], sizes = [8, 32], strides = [1, 1]} : vector<8x128xf32> to vector<8x32xf32>
    %206 = vector.extract_strided_slice %202 {offsets = [0, 96], sizes = [8, 32], strides = [1, 1]} : vector<8x128xf32> to vector<8x32xf32>
    %207 = arith.mulf %204, %162 : vector<8x32xf32>
    %208 = arith.mulf %203, %205 : vector<8x32xf32>
    %209 = arith.addf %207, %208 : vector<8x32xf32>
    %210 = math.tanh %209 : vector<8x32xf32>
    %211 = arith.mulf %206, %210 : vector<8x32xf32>
    %212 = arith.truncf %211 : vector<8x32xf32> to vector<8x32xbf16>
    %cst_51 = arith.constant dense<0.000000e+00> : vector<8x128xf32>
    %213 = tpu.matmul %212, %13, %cst_51 {dimension_numbers = #tpu.dot_dimension_numbers<[1], [0], [0], [1], [0, 0, 1, 1], [], []>} : vector<8x32xbf16>, vector<32x128xbf16>, vector<8x128xf32> -> vector<8x128xf32>
    %214 = vector.extract_strided_slice %7 {offsets = [4, 0, 0], sizes = [1, 8, 128], strides = [1, 1, 1]} : vector<8x8x128xf32> to vector<1x8x128xf32>
    %215 = vector.shape_cast %214 : vector<1x8x128xf32> to vector<8x128xf32>
    %216 = arith.truncf %189 : vector<8x32xf32> to vector<8x32xbf16>
    %cst_52 = arith.constant dense<0.000000e+00> : vector<8x128xf32>
    %217 = tpu.matmul %216, %9, %cst_52 {dimension_numbers = #tpu.dot_dimension_numbers<[1], [0], [0], [1], [0, 0, 1, 1], [], []>} : vector<8x32xbf16>, vector<32x128xbf16>, vector<8x128xf32> -> vector<8x128xf32>
    %218 = arith.addf %215, %217 : vector<8x128xf32>
    %cst_53 = arith.constant 5.000000e-01 : f32
    %219 = vector.broadcast %cst_53 : f32 to vector<8x128xf32>
    %220 = arith.mulf %218, %219 : vector<8x128xf32>
    %221 = arith.select %22, %218, %220 : vector<8x128xi1>, vector<8x128xf32>
    %222 = math.tanh %221 : vector<8x128xf32>
    %cst_54 = arith.constant 5.000000e-01 : f32
    %223 = vector.broadcast %cst_54 : f32 to vector<8x128xf32>
    %224 = arith.mulf %223, %222 : vector<8x128xf32>
    %cst_55 = arith.constant 5.000000e-01 : f32
    %225 = vector.broadcast %cst_55 : f32 to vector<8x128xf32>
    %226 = arith.addf %224, %225 : vector<8x128xf32>
    %227 = arith.select %22, %222, %226 : vector<8x128xi1>, vector<8x128xf32>
    %228 = vector.extract_strided_slice %227 {offsets = [0, 0], sizes = [8, 32], strides = [1, 1]} : vector<8x128xf32> to vector<8x32xf32>
    %229 = vector.extract_strided_slice %227 {offsets = [0, 32], sizes = [8, 32], strides = [1, 1]} : vector<8x128xf32> to vector<8x32xf32>
    %230 = vector.extract_strided_slice %227 {offsets = [0, 64], sizes = [8, 32], strides = [1, 1]} : vector<8x128xf32> to vector<8x32xf32>
    %231 = vector.extract_strided_slice %227 {offsets = [0, 96], sizes = [8, 32], strides = [1, 1]} : vector<8x128xf32> to vector<8x32xf32>
    %232 = arith.mulf %229, %187 : vector<8x32xf32>
    %233 = arith.mulf %228, %230 : vector<8x32xf32>
    %234 = arith.addf %232, %233 : vector<8x32xf32>
    %235 = math.tanh %234 : vector<8x32xf32>
    %236 = arith.mulf %231, %235 : vector<8x32xf32>
    %237 = arith.truncf %236 : vector<8x32xf32> to vector<8x32xbf16>
    %cst_56 = arith.constant dense<0.000000e+00> : vector<8x128xf32>
    %238 = tpu.matmul %237, %11, %cst_56 {dimension_numbers = #tpu.dot_dimension_numbers<[1], [0], [0], [1], [0, 0, 1, 1], [], []>} : vector<8x32xbf16>, vector<32x128xbf16>, vector<8x128xf32> -> vector<8x128xf32>
    %239 = arith.addf %213, %238 : vector<8x128xf32>
    %240 = arith.addf %239, %16 : vector<8x128xf32>
    %cst_57 = arith.constant 5.000000e-01 : f32
    %241 = vector.broadcast %cst_57 : f32 to vector<8x128xf32>
    %242 = arith.mulf %240, %241 : vector<8x128xf32>
    %243 = arith.select %22, %240, %242 : vector<8x128xi1>, vector<8x128xf32>
    %244 = math.tanh %243 : vector<8x128xf32>
    %cst_58 = arith.constant 5.000000e-01 : f32
    %245 = vector.broadcast %cst_58 : f32 to vector<8x128xf32>
    %246 = arith.mulf %245, %244 : vector<8x128xf32>
    %cst_59 = arith.constant 5.000000e-01 : f32
    %247 = vector.broadcast %cst_59 : f32 to vector<8x128xf32>
    %248 = arith.addf %246, %247 : vector<8x128xf32>
    %249 = arith.select %22, %244, %248 : vector<8x128xi1>, vector<8x128xf32>
    %250 = vector.extract_strided_slice %249 {offsets = [0, 0], sizes = [8, 32], strides = [1, 1]} : vector<8x128xf32> to vector<8x32xf32>
    %251 = vector.extract_strided_slice %249 {offsets = [0, 32], sizes = [8, 32], strides = [1, 1]} : vector<8x128xf32> to vector<8x32xf32>
    %252 = vector.extract_strided_slice %249 {offsets = [0, 64], sizes = [8, 32], strides = [1, 1]} : vector<8x128xf32> to vector<8x32xf32>
    %253 = vector.extract_strided_slice %249 {offsets = [0, 96], sizes = [8, 32], strides = [1, 1]} : vector<8x128xf32> to vector<8x32xf32>
    %254 = arith.mulf %251, %209 : vector<8x32xf32>
    %255 = arith.mulf %250, %252 : vector<8x32xf32>
    %256 = arith.addf %254, %255 : vector<8x32xf32>
    %257 = math.tanh %256 : vector<8x32xf32>
    %258 = arith.mulf %253, %257 : vector<8x32xf32>
    %259 = arith.truncf %258 : vector<8x32xf32> to vector<8x32xbf16>
    %cst_60 = arith.constant dense<0.000000e+00> : vector<8x128xf32>
    %260 = tpu.matmul %259, %13, %cst_60 {dimension_numbers = #tpu.dot_dimension_numbers<[1], [0], [0], [1], [0, 0, 1, 1], [], []>} : vector<8x32xbf16>, vector<32x128xbf16>, vector<8x128xf32> -> vector<8x128xf32>
    %261 = vector.extract_strided_slice %7 {offsets = [5, 0, 0], sizes = [1, 8, 128], strides = [1, 1, 1]} : vector<8x8x128xf32> to vector<1x8x128xf32>
    %262 = vector.shape_cast %261 : vector<1x8x128xf32> to vector<8x128xf32>
    %263 = arith.truncf %236 : vector<8x32xf32> to vector<8x32xbf16>
    %cst_61 = arith.constant dense<0.000000e+00> : vector<8x128xf32>
    %264 = tpu.matmul %263, %9, %cst_61 {dimension_numbers = #tpu.dot_dimension_numbers<[1], [0], [0], [1], [0, 0, 1, 1], [], []>} : vector<8x32xbf16>, vector<32x128xbf16>, vector<8x128xf32> -> vector<8x128xf32>
    %265 = arith.addf %262, %264 : vector<8x128xf32>
    %cst_62 = arith.constant 5.000000e-01 : f32
    %266 = vector.broadcast %cst_62 : f32 to vector<8x128xf32>
    %267 = arith.mulf %265, %266 : vector<8x128xf32>
    %268 = arith.select %22, %265, %267 : vector<8x128xi1>, vector<8x128xf32>
    %269 = math.tanh %268 : vector<8x128xf32>
    %cst_63 = arith.constant 5.000000e-01 : f32
    %270 = vector.broadcast %cst_63 : f32 to vector<8x128xf32>
    %271 = arith.mulf %270, %269 : vector<8x128xf32>
    %cst_64 = arith.constant 5.000000e-01 : f32
    %272 = vector.broadcast %cst_64 : f32 to vector<8x128xf32>
    %273 = arith.addf %271, %272 : vector<8x128xf32>
    %274 = arith.select %22, %269, %273 : vector<8x128xi1>, vector<8x128xf32>
    %275 = vector.extract_strided_slice %274 {offsets = [0, 0], sizes = [8, 32], strides = [1, 1]} : vector<8x128xf32> to vector<8x32xf32>
    %276 = vector.extract_strided_slice %274 {offsets = [0, 32], sizes = [8, 32], strides = [1, 1]} : vector<8x128xf32> to vector<8x32xf32>
    %277 = vector.extract_strided_slice %274 {offsets = [0, 64], sizes = [8, 32], strides = [1, 1]} : vector<8x128xf32> to vector<8x32xf32>
    %278 = vector.extract_strided_slice %274 {offsets = [0, 96], sizes = [8, 32], strides = [1, 1]} : vector<8x128xf32> to vector<8x32xf32>
    %279 = arith.mulf %276, %234 : vector<8x32xf32>
    %280 = arith.mulf %275, %277 : vector<8x32xf32>
    %281 = arith.addf %279, %280 : vector<8x32xf32>
    %282 = math.tanh %281 : vector<8x32xf32>
    %283 = arith.mulf %278, %282 : vector<8x32xf32>
    %284 = arith.truncf %283 : vector<8x32xf32> to vector<8x32xbf16>
    %cst_65 = arith.constant dense<0.000000e+00> : vector<8x128xf32>
    %285 = tpu.matmul %284, %11, %cst_65 {dimension_numbers = #tpu.dot_dimension_numbers<[1], [0], [0], [1], [0, 0, 1, 1], [], []>} : vector<8x32xbf16>, vector<32x128xbf16>, vector<8x128xf32> -> vector<8x128xf32>
    %286 = arith.addf %260, %285 : vector<8x128xf32>
    %287 = arith.addf %286, %16 : vector<8x128xf32>
    %cst_66 = arith.constant 5.000000e-01 : f32
    %288 = vector.broadcast %cst_66 : f32 to vector<8x128xf32>
    %289 = arith.mulf %287, %288 : vector<8x128xf32>
    %290 = arith.select %22, %287, %289 : vector<8x128xi1>, vector<8x128xf32>
    %291 = math.tanh %290 : vector<8x128xf32>
    %cst_67 = arith.constant 5.000000e-01 : f32
    %292 = vector.broadcast %cst_67 : f32 to vector<8x128xf32>
    %293 = arith.mulf %292, %291 : vector<8x128xf32>
    %cst_68 = arith.constant 5.000000e-01 : f32
    %294 = vector.broadcast %cst_68 : f32 to vector<8x128xf32>
    %295 = arith.addf %293, %294 : vector<8x128xf32>
    %296 = arith.select %22, %291, %295 : vector<8x128xi1>, vector<8x128xf32>
    %297 = vector.extract_strided_slice %296 {offsets = [0, 0], sizes = [8, 32], strides = [1, 1]} : vector<8x128xf32> to vector<8x32xf32>
    %298 = vector.extract_strided_slice %296 {offsets = [0, 32], sizes = [8, 32], strides = [1, 1]} : vector<8x128xf32> to vector<8x32xf32>
    %299 = vector.extract_strided_slice %296 {offsets = [0, 64], sizes = [8, 32], strides = [1, 1]} : vector<8x128xf32> to vector<8x32xf32>
    %300 = vector.extract_strided_slice %296 {offsets = [0, 96], sizes = [8, 32], strides = [1, 1]} : vector<8x128xf32> to vector<8x32xf32>
    %301 = arith.mulf %298, %256 : vector<8x32xf32>
    %302 = arith.mulf %297, %299 : vector<8x32xf32>
    %303 = arith.addf %301, %302 : vector<8x32xf32>
    %304 = math.tanh %303 : vector<8x32xf32>
    %305 = arith.mulf %300, %304 : vector<8x32xf32>
    %306 = arith.truncf %305 : vector<8x32xf32> to vector<8x32xbf16>
    %cst_69 = arith.constant dense<0.000000e+00> : vector<8x128xf32>
    %307 = tpu.matmul %306, %13, %cst_69 {dimension_numbers = #tpu.dot_dimension_numbers<[1], [0], [0], [1], [0, 0, 1, 1], [], []>} : vector<8x32xbf16>, vector<32x128xbf16>, vector<8x128xf32> -> vector<8x128xf32>
    %308 = vector.extract_strided_slice %7 {offsets = [6, 0, 0], sizes = [1, 8, 128], strides = [1, 1, 1]} : vector<8x8x128xf32> to vector<1x8x128xf32>
    %309 = vector.shape_cast %308 : vector<1x8x128xf32> to vector<8x128xf32>
    %310 = arith.truncf %283 : vector<8x32xf32> to vector<8x32xbf16>
    %cst_70 = arith.constant dense<0.000000e+00> : vector<8x128xf32>
    %311 = tpu.matmul %310, %9, %cst_70 {dimension_numbers = #tpu.dot_dimension_numbers<[1], [0], [0], [1], [0, 0, 1, 1], [], []>} : vector<8x32xbf16>, vector<32x128xbf16>, vector<8x128xf32> -> vector<8x128xf32>
    %312 = arith.addf %309, %311 : vector<8x128xf32>
    %cst_71 = arith.constant 5.000000e-01 : f32
    %313 = vector.broadcast %cst_71 : f32 to vector<8x128xf32>
    %314 = arith.mulf %312, %313 : vector<8x128xf32>
    %315 = arith.select %22, %312, %314 : vector<8x128xi1>, vector<8x128xf32>
    %316 = math.tanh %315 : vector<8x128xf32>
    %cst_72 = arith.constant 5.000000e-01 : f32
    %317 = vector.broadcast %cst_72 : f32 to vector<8x128xf32>
    %318 = arith.mulf %317, %316 : vector<8x128xf32>
    %cst_73 = arith.constant 5.000000e-01 : f32
    %319 = vector.broadcast %cst_73 : f32 to vector<8x128xf32>
    %320 = arith.addf %318, %319 : vector<8x128xf32>
    %321 = arith.select %22, %316, %320 : vector<8x128xi1>, vector<8x128xf32>
    %322 = vector.extract_strided_slice %321 {offsets = [0, 0], sizes = [8, 32], strides = [1, 1]} : vector<8x128xf32> to vector<8x32xf32>
    %323 = vector.extract_strided_slice %321 {offsets = [0, 32], sizes = [8, 32], strides = [1, 1]} : vector<8x128xf32> to vector<8x32xf32>
    %324 = vector.extract_strided_slice %321 {offsets = [0, 64], sizes = [8, 32], strides = [1, 1]} : vector<8x128xf32> to vector<8x32xf32>
    %325 = vector.extract_strided_slice %321 {offsets = [0, 96], sizes = [8, 32], strides = [1, 1]} : vector<8x128xf32> to vector<8x32xf32>
    %326 = arith.mulf %323, %281 : vector<8x32xf32>
    %327 = arith.mulf %322, %324 : vector<8x32xf32>
    %328 = arith.addf %326, %327 : vector<8x32xf32>
    %329 = math.tanh %328 : vector<8x32xf32>
    %330 = arith.mulf %325, %329 : vector<8x32xf32>
    %331 = arith.truncf %330 : vector<8x32xf32> to vector<8x32xbf16>
    %cst_74 = arith.constant dense<0.000000e+00> : vector<8x128xf32>
    %332 = tpu.matmul %331, %11, %cst_74 {dimension_numbers = #tpu.dot_dimension_numbers<[1], [0], [0], [1], [0, 0, 1, 1], [], []>} : vector<8x32xbf16>, vector<32x128xbf16>, vector<8x128xf32> -> vector<8x128xf32>
    %333 = arith.addf %307, %332 : vector<8x128xf32>
    %334 = arith.addf %333, %16 : vector<8x128xf32>
    %cst_75 = arith.constant 5.000000e-01 : f32
    %335 = vector.broadcast %cst_75 : f32 to vector<8x128xf32>
    %336 = arith.mulf %334, %335 : vector<8x128xf32>
    %337 = arith.select %22, %334, %336 : vector<8x128xi1>, vector<8x128xf32>
    %338 = math.tanh %337 : vector<8x128xf32>
    %cst_76 = arith.constant 5.000000e-01 : f32
    %339 = vector.broadcast %cst_76 : f32 to vector<8x128xf32>
    %340 = arith.mulf %339, %338 : vector<8x128xf32>
    %cst_77 = arith.constant 5.000000e-01 : f32
    %341 = vector.broadcast %cst_77 : f32 to vector<8x128xf32>
    %342 = arith.addf %340, %341 : vector<8x128xf32>
    %343 = arith.select %22, %338, %342 : vector<8x128xi1>, vector<8x128xf32>
    %344 = vector.extract_strided_slice %343 {offsets = [0, 0], sizes = [8, 32], strides = [1, 1]} : vector<8x128xf32> to vector<8x32xf32>
    %345 = vector.extract_strided_slice %343 {offsets = [0, 32], sizes = [8, 32], strides = [1, 1]} : vector<8x128xf32> to vector<8x32xf32>
    %346 = vector.extract_strided_slice %343 {offsets = [0, 64], sizes = [8, 32], strides = [1, 1]} : vector<8x128xf32> to vector<8x32xf32>
    %347 = vector.extract_strided_slice %343 {offsets = [0, 96], sizes = [8, 32], strides = [1, 1]} : vector<8x128xf32> to vector<8x32xf32>
    %348 = arith.mulf %345, %303 : vector<8x32xf32>
    %349 = arith.mulf %344, %346 : vector<8x32xf32>
    %350 = arith.addf %348, %349 : vector<8x32xf32>
    %351 = math.tanh %350 : vector<8x32xf32>
    %352 = arith.mulf %347, %351 : vector<8x32xf32>
    %353 = arith.truncf %352 : vector<8x32xf32> to vector<8x32xbf16>
    %cst_78 = arith.constant dense<0.000000e+00> : vector<8x128xf32>
    %354 = tpu.matmul %353, %13, %cst_78 {dimension_numbers = #tpu.dot_dimension_numbers<[1], [0], [0], [1], [0, 0, 1, 1], [], []>} : vector<8x32xbf16>, vector<32x128xbf16>, vector<8x128xf32> -> vector<8x128xf32>
    %355 = vector.extract_strided_slice %7 {offsets = [7, 0, 0], sizes = [1, 8, 128], strides = [1, 1, 1]} : vector<8x8x128xf32> to vector<1x8x128xf32>
    %356 = vector.shape_cast %355 : vector<1x8x128xf32> to vector<8x128xf32>
    %357 = arith.truncf %330 : vector<8x32xf32> to vector<8x32xbf16>
    %cst_79 = arith.constant dense<0.000000e+00> : vector<8x128xf32>
    %358 = tpu.matmul %357, %9, %cst_79 {dimension_numbers = #tpu.dot_dimension_numbers<[1], [0], [0], [1], [0, 0, 1, 1], [], []>} : vector<8x32xbf16>, vector<32x128xbf16>, vector<8x128xf32> -> vector<8x128xf32>
    %359 = arith.addf %356, %358 : vector<8x128xf32>
    %cst_80 = arith.constant 5.000000e-01 : f32
    %360 = vector.broadcast %cst_80 : f32 to vector<8x128xf32>
    %361 = arith.mulf %359, %360 : vector<8x128xf32>
    %362 = arith.select %22, %359, %361 : vector<8x128xi1>, vector<8x128xf32>
    %363 = math.tanh %362 : vector<8x128xf32>
    %cst_81 = arith.constant 5.000000e-01 : f32
    %364 = vector.broadcast %cst_81 : f32 to vector<8x128xf32>
    %365 = arith.mulf %364, %363 : vector<8x128xf32>
    %cst_82 = arith.constant 5.000000e-01 : f32
    %366 = vector.broadcast %cst_82 : f32 to vector<8x128xf32>
    %367 = arith.addf %365, %366 : vector<8x128xf32>
    %368 = arith.select %22, %363, %367 : vector<8x128xi1>, vector<8x128xf32>
    %369 = vector.extract_strided_slice %368 {offsets = [0, 0], sizes = [8, 32], strides = [1, 1]} : vector<8x128xf32> to vector<8x32xf32>
    %370 = vector.extract_strided_slice %368 {offsets = [0, 32], sizes = [8, 32], strides = [1, 1]} : vector<8x128xf32> to vector<8x32xf32>
    %371 = vector.extract_strided_slice %368 {offsets = [0, 64], sizes = [8, 32], strides = [1, 1]} : vector<8x128xf32> to vector<8x32xf32>
    %372 = vector.extract_strided_slice %368 {offsets = [0, 96], sizes = [8, 32], strides = [1, 1]} : vector<8x128xf32> to vector<8x32xf32>
    %373 = arith.mulf %370, %328 : vector<8x32xf32>
    %374 = arith.mulf %369, %371 : vector<8x32xf32>
    %375 = arith.addf %373, %374 : vector<8x32xf32>
    %376 = math.tanh %375 : vector<8x32xf32>
    %377 = arith.mulf %372, %376 : vector<8x32xf32>
    %378 = arith.truncf %377 : vector<8x32xf32> to vector<8x32xbf16>
    %cst_83 = arith.constant dense<0.000000e+00> : vector<8x128xf32>
    %379 = tpu.matmul %378, %11, %cst_83 {dimension_numbers = #tpu.dot_dimension_numbers<[1], [0], [0], [1], [0, 0, 1, 1], [], []>} : vector<8x32xbf16>, vector<32x128xbf16>, vector<8x128xf32> -> vector<8x128xf32>
    %380 = arith.addf %354, %379 : vector<8x128xf32>
    %381 = arith.addf %380, %16 : vector<8x128xf32>
    %cst_84 = arith.constant 5.000000e-01 : f32
    %382 = vector.broadcast %cst_84 : f32 to vector<8x128xf32>
    %383 = arith.mulf %381, %382 : vector<8x128xf32>
    %384 = arith.select %22, %381, %383 : vector<8x128xi1>, vector<8x128xf32>
    %385 = math.tanh %384 : vector<8x128xf32>
    %cst_85 = arith.constant 5.000000e-01 : f32
    %386 = vector.broadcast %cst_85 : f32 to vector<8x128xf32>
    %387 = arith.mulf %386, %385 : vector<8x128xf32>
    %cst_86 = arith.constant 5.000000e-01 : f32
    %388 = vector.broadcast %cst_86 : f32 to vector<8x128xf32>
    %389 = arith.addf %387, %388 : vector<8x128xf32>
    %390 = arith.select %22, %385, %389 : vector<8x128xi1>, vector<8x128xf32>
    %391 = vector.extract_strided_slice %390 {offsets = [0, 0], sizes = [8, 32], strides = [1, 1]} : vector<8x128xf32> to vector<8x32xf32>
    %392 = vector.extract_strided_slice %390 {offsets = [0, 32], sizes = [8, 32], strides = [1, 1]} : vector<8x128xf32> to vector<8x32xf32>
    %393 = vector.extract_strided_slice %390 {offsets = [0, 64], sizes = [8, 32], strides = [1, 1]} : vector<8x128xf32> to vector<8x32xf32>
    %394 = vector.extract_strided_slice %390 {offsets = [0, 96], sizes = [8, 32], strides = [1, 1]} : vector<8x128xf32> to vector<8x32xf32>
    %395 = arith.mulf %392, %350 : vector<8x32xf32>
    %396 = arith.mulf %391, %393 : vector<8x32xf32>
    %397 = arith.addf %395, %396 : vector<8x32xf32>
    %398 = math.tanh %397 : vector<8x32xf32>
    %399 = arith.mulf %394, %398 : vector<8x32xf32>
    %c0_87 = arith.constant 0 : index
    %c0_88 = arith.constant 0 : index
    %400 = vector.load %arg8[%c0_87, %c0_88] : memref<32x16xf32, #tpu.memory_space<vmem>>, vector<32x16xf32>
    %cst_89 = arith.constant dense<0.000000e+00> : vector<8x16xf32>
    %401 = tpu.matmul %399, %400, %cst_89 {dimension_numbers = #tpu.dot_dimension_numbers<[1], [0], [0], [1], [0, 0, 1, 1], [], []>} : vector<8x32xf32>, vector<32x16xf32>, vector<8x16xf32> -> vector<8x16xf32>
    %c0_90 = arith.constant 0 : index
    %c0_91 = arith.constant 0 : index
    %402 = vector.load %arg9[%c0_90, %c0_91] : memref<1x16xf32, #tpu.memory_space<vmem>>, vector<1x16xf32>
    %403 = vector.broadcast %402 : vector<1x16xf32> to vector<8x16xf32>
    %404 = arith.addf %401, %403 : vector<8x16xf32>
    %cst_92 = arith.constant 0.000000e+00 : f32
    %405 = vector.broadcast %cst_92 : f32 to vector<8x16xf32>
    %406 = arith.maximumf %404, %405 : vector<8x16xf32>
    %c0_93 = arith.constant 0 : index
    %c0_94 = arith.constant 0 : index
    %407 = vector.load %arg10[%c0_93, %c0_94] : memref<16x8xf32, #tpu.memory_space<vmem>>, vector<16x8xf32>
    %cst_95 = arith.constant dense<0.000000e+00> : vector<8x8xf32>
    %408 = tpu.matmul %406, %407, %cst_95 {dimension_numbers = #tpu.dot_dimension_numbers<[1], [0], [0], [1], [0, 0, 1, 1], [], []>} : vector<8x16xf32>, vector<16x8xf32>, vector<8x8xf32> -> vector<8x8xf32>
    %c0_96 = arith.constant 0 : index
    %c0_97 = arith.constant 0 : index
    %409 = vector.load %arg11[%c0_96, %c0_97] : memref<1x8xf32, #tpu.memory_space<vmem>>, vector<1x8xf32>
    %410 = vector.broadcast %409 : vector<1x8xf32> to vector<8x8xf32>
    %411 = arith.addf %408, %410 : vector<8x8xf32>
    %cst_98 = arith.constant 0.000000e+00 : f32
    %412 = vector.broadcast %cst_98 : f32 to vector<8x8xf32>
    %413 = arith.maximumf %411, %412 : vector<8x8xf32>
    %c0_99 = arith.constant 0 : index
    %c0_100 = arith.constant 0 : index
    %414 = vector.load %arg12[%c0_99, %c0_100] : memref<1x8xf32, #tpu.memory_space<vmem>>, vector<1x8xf32>
    %415 = vector.broadcast %414 : vector<1x8xf32> to vector<8x8xf32>
    %416 = arith.mulf %413, %415 : vector<8x8xf32>
    %cst_101 = arith.constant dense<0.000000e+00> : vector<8xf32>
    %417 = vector.multi_reduction <add>, %416, %cst_101 [1] : vector<8x8xf32> to vector<8xf32>
    %418 = vector.shape_cast %417 : vector<8xf32> to vector<8x1xf32>
    %c0_102 = arith.constant 0 : index
    %c0_103 = arith.constant 0 : index
    %419 = vector.load %arg13[%c0_102, %c0_103] : memref<1x1xf32, #tpu.memory_space<vmem>>, vector<1x1xf32>
    %420 = vector.broadcast %419 : vector<1x1xf32> to vector<8x1xf32>
    %421 = arith.addf %418, %420 : vector<8x1xf32>
    %422 = vector.shape_cast %421 : vector<8x1xf32> to vector<8x1xf32>
    %423 = vector.broadcast %422 : vector<8x1xf32> to vector<8x128xf32>
    %c0_104 = arith.constant 0 : index
    %c0_105 = arith.constant 0 : index
    %424 = vector.load %arg14[%c0_104, %c0_105] : memref<8x128xf32, #tpu.memory_space<vmem>>, vector<8x128xf32>
    tpu.vector_store %arg14[%c0_104, %c0_105], %423 {strides = array<i32>} : memref<8x128xf32, #tpu.memory_space<vmem>>, vector<8x128xf32>,
    return
  }
  func.func @transform_0(%arg0: i32) -> (i32, i32, i32) {
    %c0_i32 = arith.constant 0 : i32
    %c0_i32_0 = arith.constant 0 : i32
    %c0_i32_1 = arith.constant 0 : i32
    return %c0_i32, %arg0, %c0_i32_0 : i32, i32, i32
  }
  func.func @transform_1(%arg0: i32) -> (i32, i32) {
    %c0_i32 = arith.constant 0 : i32
    %c0_i32_0 = arith.constant 0 : i32
    %c0_i32_1 = arith.constant 0 : i32
    return %c0_i32, %c0_i32_0 : i32, i32
  }
  func.func @transform_2(%arg0: i32) -> (i32, i32) {
    %c0_i32 = arith.constant 0 : i32
    %c0_i32_0 = arith.constant 0 : i32
    %c0_i32_1 = arith.constant 0 : i32
    return %c0_i32, %c0_i32_0 : i32, i32
  }
  func.func @transform_3(%arg0: i32) -> (i32, i32) {
    %c0_i32 = arith.constant 0 : i32
    %c0_i32_0 = arith.constant 0 : i32
    %c0_i32_1 = arith.constant 0 : i32
    return %c0_i32, %c0_i32_0 : i32, i32
  }
  func.func @transform_4(%arg0: i32) -> (i32, i32) {
    %c0_i32 = arith.constant 0 : i32
    %c0_i32_0 = arith.constant 0 : i32
    %c0_i32_1 = arith.constant 0 : i32
    return %c0_i32, %c0_i32_0 : i32, i32
  }
  func.func @transform_5(%arg0: i32) -> (i32, i32) {
    %c0_i32 = arith.constant 0 : i32
    %c0_i32_0 = arith.constant 0 : i32
    %c0_i32_1 = arith.constant 0 : i32
    return %c0_i32, %c0_i32_0 : i32, i32
  }
  func.func @transform_6(%arg0: i32) -> (i32, i32) {
    %c0_i32 = arith.constant 0 : i32
    %c0_i32_0 = arith.constant 0 : i32
    %c0_i32_1 = arith.constant 0 : i32
    return %c0_i32, %c0_i32_0 : i32, i32
  }
  func.func @transform_7(%arg0: i32) -> (i32, i32) {
    %c0_i32 = arith.constant 0 : i32
    %c0_i32_0 = arith.constant 0 : i32
    %c0_i32_1 = arith.constant 0 : i32
    return %c0_i32, %c0_i32_0 : i32, i32
  }
  func.func @transform_8(%arg0: i32) -> (i32, i32) {
    %c0_i32 = arith.constant 0 : i32
    %c0_i32_0 = arith.constant 0 : i32
    %c0_i32_1 = arith.constant 0 : i32
    return %c0_i32, %c0_i32_0 : i32, i32
  }
  func.func @transform_9(%arg0: i32) -> (i32, i32) {
    %c0_i32 = arith.constant 0 : i32
    %c0_i32_0 = arith.constant 0 : i32
    %c0_i32_1 = arith.constant 0 : i32
    return %c0_i32, %c0_i32_0 : i32, i32
  }
  func.func @transform_10(%arg0: i32) -> (i32, i32) {
    %c0_i32 = arith.constant 0 : i32
    %c0_i32_0 = arith.constant 0 : i32
    %c0_i32_1 = arith.constant 0 : i32
    return %c0_i32, %c0_i32_0 : i32, i32
  }
  func.func @transform_11(%arg0: i32) -> (i32, i32) {
    %c0_i32 = arith.constant 0 : i32
    %c0_i32_0 = arith.constant 0 : i32
    %c0_i32_1 = arith.constant 0 : i32
    return %c0_i32, %c0_i32_0 : i32, i32
  }
  func.func @transform_12(%arg0: i32) -> (i32, i32) {
    %c0_i32 = arith.constant 0 : i32
    %c0_i32_0 = arith.constant 0 : i32
    %c0_i32_1 = arith.constant 0 : i32
    return %c0_i32, %c0_i32_0 : i32, i32
  }
  func.func @transform_13(%arg0: i32) -> (i32, i32) {
    %c0_i32 = arith.constant 0 : i32
    %c0_i32_0 = arith.constant 0 : i32
    return %arg0, %c0_i32 : i32, i32
  }
}

</mosaic_0001>

<bundles_post_ra>
// kernel: tpu_custom_call.1
= control target key start
LH: loop header
LB: loop body
LE: loop exit
PB: predicated region body
PF: predicated region fallthrough
CT: control target
= control target key end

     0   :  { %s1746_s0 = inlined_call_operand.hbm [shape: f32[8,8,8], index: 0, kind: input, shape index: {}]   ;;  %s1747_s1 = inlined_call_operand.vmem [shape: f32[8,128], index: 1, kind: input, shape index: {}]   ;;  %s1748_s2 = inlined_call_operand.vmem [shape: f32[32,128], index: 2, kind: input, shape index: {}]   ;;  %s1749_s3 = inlined_call_operand.vmem [shape: f32[1,128], index: 3, kind: input, shape index: {}]   ;;  %s1750_s4 = inlined_call_operand.hbm [shape: f32[32,128], index: 4, kind: input, shape index: {}]   ;;  %s1751_s5 = inlined_call_operand.hbm [shape: f32[32,128], index: 5, kind: input, shape index: {}]   ;;  %s1752_s6 = inlined_call_operand.vmem [shape: f32[1,128], index: 6, kind: input, shape index: {}]   ;;  %s1753_s7 = inlined_call_operand.vmem [shape: f32[32,16], index: 7, kind: input, shape index: {}]   ;;  %s1754_s8 = inlined_call_operand.vmem [shape: f32[1,16], index: 8, kind: input, shape index: {}]   ;;  %s1755_s9 = inlined_call_operand.vmem [shape: f32[16,8], index: 9, kind: input, shape index: {}]   ;;  %s1756_s10 = inlined_call_operand.vmem [shape: f32[1,8], index: 10, kind: input, shape index: {}]   ;;  %s1757_s11 = inlined_call_operand.vmem [shape: f32[1,8], index: 11, kind: input, shape index: {}]   ;;  %s1758_s12 = inlined_call_operand.<no memory space> [shape: f32[1,1], index: 12, kind: input, shape index: {}]   ;;  %s1759_s13 = inlined_call_operand.hbm [shape: f32[8,128], index: 13, kind: output, shape index: {}]  }
   0x1   :  { %v18_v0 = vstv %s1758_s12 }
   0x2   :  { %19 = vst [vmem:[#allocation2] sm:$0x1] %v18_v0 }
   0x3   :  { %20 = vsyncpa [#allocation4], 0 }
   0x4   :  { %21 = vsyncpa [#allocation7], 0 }
   0x5   :  { %22 = vsyncpa [#allocation5], 0  ;;  %s46_s29 = sshll.u32 %s1750_s4, 4  ;;  %s1323_s30 = smov [#allocation6]   ;;  %s47_s29 = int_to_ptr.hbm [resolvable:$true] %s46_s29 }
   0x6   :  { %s48_s14 = sshll.u32 %s1323_s30, 4  ;;  %s27_s17 = sshll.u32 %s1746_s0, 4  ;;  %s49_s14 = int_to_ptr.vmem [resolvable:$true] %s48_s14  ;;  %s28_s17 = int_to_ptr.hbm [resolvable:$true] %s27_s17 }
   0x7   :  { %s1324_s18 = smov 128   ;;  %s1325_s19 = smov 8  }
   0x8   :  { %54 = dma.hbm_to_vmem [thread:$0]  %s47_s29, 512, %s49_s14, [#allocation7], %s1324_s18, %s1324_s18, %s1325_s19  }
   0x9   :  { %s1326_s12 = smov [#allocation3]   ;;  %s59_s23 = sshll.u32 %s1751_s5, 4  ;;  %s60_s23 = int_to_ptr.hbm [resolvable:$true] %s59_s23 }
   0xa   :  { %s29_s20 = sshll.u32 %s1326_s12, 4  ;;  %s1327_s4 = smov [#allocation8]   ;;  %s30_s20 = int_to_ptr.vmem [resolvable:$true] %s29_s20 }
   0xb   :  { %35 = dma.hbm_to_vmem [thread:$0]  %s28_s17, 1024, %s30_s20, [#allocation4], %s1324_s18, %s1324_s18, %s1325_s19  }
   0xc   :  { %s61_s24 = sshll.u32 %s1327_s4, 4  ;;  %s62_s24 = int_to_ptr.vmem [resolvable:$true] %s61_s24 }
   0xd   :  { %67 = dma.hbm_to_vmem [thread:$0]  %s60_s23, 512, %s62_s24, [#allocation7], %s1324_s18, %s1324_s18, %s1325_s19  }
   0xe   :  { %1317 = dma.done.wait [#allocation4], 1024  }
   0xf   :  { %1318 = vsyncadd [#allocation4], 4294966272 }
  0x10   :  { %1319 = dma.done.wait [#allocation7], 1024  }
  0x11   :  { %1320 = vsyncadd [#allocation7], 4294966272  ;;  %v1328_v1 = vmov 0   ;;  %vm108_vm0 = vcmask 64512   ;;  %v176_v2 = vld [vmem:[%s1748_s2 + $0x10] sm:$0xff]  ;;  %v177_v3 = vld [vmem:[%s1748_s2 + $0x18] sm:$0xff]  ;;  %v196_v10 = vlaneseq }
  0x12   :  { %1149 = vset.pattern.permute.xlu2 %v1328_v1  ;;  %1150 = vset.pattern.permute.xlu0 %v1328_v1  ;;  %v103_v4 = vld [vmem:[%s1747_s1] sm:$0xff]  ;;  %v1425_v5 = vpack.c.bf16 %v177_v3, %v176_v2  ;;  %v175_v7 = vld [vmem:[%s1748_s2 + $0x8] sm:$0xff]  ;;  %s1330_s16 = smov 32   ;;  %v188_v31 = vld [vmem:[#allocation8 + $0x10] sm:$0xff]  ;;  %vm201_vm4 = vcmask 261120   ;;  %vm1046_vm5 = vcmask 130048  }
  0x13   :  { %148 = vmatpush.msra.mxu0 %v103_v4  ;;  %v174_v6 = vld [vmem:[%s1748_s2] sm:$0xff]  ;;  %v197_v13 = vand.u32 127, %v196_v10  ;;  %v187_v35 = vld [vmem:[#allocation8 + $0x8] sm:$0xff]  ;;  %v182_v36 = vld [vmem:[#allocation6 + $0x10] sm:$0xff] }
  0x14   :  { %v95_v8 = vld [vmem:[#allocation3] sm:$0xff]  ;;  %211 = vmatpush.bf16.msra.mxu1 %v1425_v5  ;;  %v1435_v9 = vpack.c.bf16 %v175_v7, %v174_v6  ;;  %v1448_v11 = vld [vmem:[%s1749_s3] ss:$0 sm:$0xff]  ;;  %s1329_s3 = smov 64   ;;  %v181_v40 = vld [vmem:[#allocation6 + $0x8] sm:$0xff] }
  0x15   :  { %1108 = vmatmul.msk.f32.vlgmr.msra.gmra.mxu0 %vm108_vm0, %v95_v8  ;;  %vm198_vm1 = vcmp.ge.s32.totalorder %v197_v13, 64  ;;  %vm199_vm2 = vcmp.lt.s32.totalorder %v197_v13, 96  ;;  %v189_v32 = vld [vmem:[#allocation8 + $0x18] sm:$0xff]  ;;  %v186_v33 = vld [vmem:[#allocation8] sm:$0xff]  ;;  %v96_v41 = vld [vmem:[#allocation3 + $0x8] sm:$0xff] }
  0x16   :  { %609 = vmatpush.bf16.msrb.mxu0 %v1425_v5  ;;  %vm1451_vm3 = vmand %vm198_vm1, %vm199_vm2  ;;  %v1465_v34 = vpack.c.bf16 %v189_v32, %v188_v31  ;;  %v183_v37 = vld [vmem:[#allocation6 + $0x18] sm:$0xff]  ;;  %v180_v39 = vld [vmem:[#allocation6] sm:$0xff]  ;;  %v1470_v42 = vpack.c.bf16 %v187_v35, %v186_v33 }
  0x17   :  { %v1467_v38 = vpack.c.bf16 %v183_v37, %v182_v36  ;;  %v1474_v43 = vpack.c.bf16 %v181_v40, %v180_v39  ;;  %v1498_v54 = vld [vmem:[%s1752_s6] ss:$0 sm:$0xff]  ;;  %v1008_v17 = vld [vmem:[%s1753_s7 + $0x10] sm:$0xff] }
  0x18   :  { %212 = vmatpush.bf16.msra.mxu1 %v1435_v9  ;;  %268 = vmatpush.bf16.msra.mxu3 %v1465_v34 }
  0x19   :  { %255 = vmatpush.bf16.msra.mxu2 %v1467_v38 }
  0x1a   :  { %610 = vmatpush.bf16.msrb.mxu0 %v1435_v9 }
  0x1b   :  { %213 = vmatmul.bf16.vlgmr.msra.gmra.mxu1 %v1328_v1 }
  0x1c   :  { %306 = vmatpush.bf16.msrb.mxu1 %v1425_v5  ;;  %269 = vmatpush.bf16.msra.mxu3 %v1470_v42 }
  0x1d   :  { %1109 = vmatmul.msk.f32.gmra.mxu0 %vm108_vm0, %v96_v41  ;;  %256 = vmatpush.bf16.msra.mxu2 %v1474_v43 }
  0x1e   :  { %754 = vmatpush.bf16.msra.mxu0 %v1467_v38 }
  0x1f   :  { %270 = vmatmul.bf16.vlgmr.msra.gmra.mxu3 %v1328_v1 }
  0x20   :  { %307 = vmatpush.bf16.msrb.mxu1 %v1435_v9  ;;  %369 = vmatpush.bf16.msrb.mxu3 %v1465_v34 }
  0x21   :  { %350 = vmatpush.bf16.msrb.mxu2 %v1467_v38 }
  0x22   :  { %755 = vmatpush.bf16.msra.mxu0 %v1474_v43 }
  0x24   :  { %407 = vmatpush.bf16.msra.mxu1 %v1425_v5  ;;  %370 = vmatpush.bf16.msrb.mxu3 %v1470_v42 }
  0x25   :  { %351 = vmatpush.bf16.msrb.mxu2 %v1474_v43 }
  0x28   :  { %408 = vmatpush.bf16.msra.mxu1 %v1435_v9  ;;  %470 = vmatpush.bf16.msra.mxu3 %v1465_v34 }
  0x2c   :  { %471 = vmatpush.bf16.msra.mxu3 %v1470_v42 }
  0x92   :  { %v150_v12 = vpop.f32.mrf.mxu0 }
  0x93   :  { %v151_v14 = vadd.f32 %v1448_v11, %v150_v12 }
  0x98   :  { %v214_v15 = vpop.f32.mrf.mxu1 }
  0x99   :  { %v218_v16 = vadd.f32 %v214_v15, %v151_v14 }
  0x9a   :  { %v153_v50 = vpop.f32.mrf.mxu0 }
  0x9b   :  { %v219_v18 = vmul.f32 0.5, %v218_v16  ;;  %v154_v52 = vadd.f32 %v1448_v11, %v153_v50 }
  0x9d   :  { %v220_v19 = vsel %vm1451_vm3, %v218_v16, %v219_v18 }
  0x9e   :  { %1157 = vtanh.f32 %v220_v19 }
  0xa0   :  { %v216_v20 = vpop.f32.mrf.mxu1 }
  0xa2   :  { %v271_v47 = vpop.f32.mrf.mxu3 }
  0xa4   :  { %v1158_v21 = vpop.eup %1157 }
  0xa5   :  { %v222_v22 = vmul.f32 0.5, %v1158_v21 }
  0xa7   :  { %v223_v23 = vadd.f32 0.5, %v222_v22 }
  0xa9   :  { %v224_v24 = vsel %vm1451_vm3, %v1158_v21, %v223_v23 }
  0xaa   :  { %227 = vrot.lane.b32.xlu0 %v224_v24, %s1329_s3  ;;  %v225_v27 = vmul.f32 0.0, %v224_v24  ;;  %v273_v49 = vpop.f32.mrf.mxu3 }
 0x11c   :  { %v228_v25 = vpop.permute.xlu0 %227 }
 0x11d   :  { %v230_v26 = vmul.f32 %v228_v25, %v224_v24 }
 0x11f   :  { %232 = vrot.lane.b32.xlu0 %v230_v26, %s1330_s16 }
 0x191   :  { %v233_v28 = vpop.permute.xlu0 %232 }
 0x192   :  { %v1461_v29 = vadd.f32 %v233_v28, %v225_v27 }
 0x194   :  { %1159 = vtanh.f32 %v1461_v29 }
 0x19a   :  { %v1160_v30 = vpop.eup %1159 }
 0x19b   :  { %238 = vrot.lane.b32.xlu1 %v1160_v30, %s1329_s3 }
 0x20d   :  { %v239_v44 = vpop.permute.xlu1 %238 }
 0x20e   :  { %v241_v45 = vmul.f32 %v239_v44, %v224_v24 }
 0x210   :  { %v242_v46 = vpack.c.bf16 %v241_v45, %v241_v45 }
 0x212   :  { %244 = vrot.lane.b32.xlu1 %v242_v46, %s1330_s16 }
 0x284   :  { %v245_v48 = vpop.permute.xlu1 %244 }
 0x285   :  { %1116 = vmatmul.msk.bf16.vlgmr.msra.gmra.mxu2 %vm201_vm4, %v245_v48  ;;  %1117 = vmatmul.msk.bf16.vlgmr.msrb.gmra.mxu1 %vm201_vm4, %v245_v48 }
 0x286   :  { %451 = vmatpush.bf16.msra.mxu2 %v1467_v38  ;;  %508 = vmatpush.bf16.msrb.mxu1 %v1425_v5 }
 0x28a   :  { %452 = vmatpush.bf16.msra.mxu2 %v1474_v43  ;;  %509 = vmatpush.bf16.msrb.mxu1 %v1435_v9 }
 0x302   :  { %v309_v51 = vpop.f32.mrf.mxu1 }
 0x303   :  { %v313_v53 = vadd.f32 %v309_v51, %v154_v52 }
 0x305   :  { %v314_v58 = vmul.f32 0.5, %v313_v53 }
 0x307   :  { %v315_v61 = vsel %vm1451_vm3, %v313_v53, %v314_v58 }
 0x308   :  { %v258_v55 = vpop.f32.mrf.mxu2 }
 0x309   :  { %v272_v56 = vadd.f32 %v271_v47, %v258_v55 }
 0x30a   :  { %v311_v57 = vpop.f32.mrf.mxu1 }
 0x30b   :  { %v275_v59 = vadd.f32 %v1498_v54, %v272_v56 }
 0x30d   :  { %v276_v60 = vmul.f32 0.5, %v275_v59 }
 0x30f   :  { %v277_v62 = vsel %vm1451_vm3, %v275_v59, %v276_v60 }
 0x310   :  { %1161 = vtanh.f32 %v277_v62  ;;  %v260_v63 = vpop.f32.mrf.mxu2 }
 0x311   :  { %1163 = vtanh.f32 %v315_v61 }
 0x316   :  { %v1162_v0 = vpop.eup %1161 }
 0x317   :  { %v279_v1 = vmul.f32 0.5, %v1162_v0  ;;  %v1164_v2 = vpop.eup %1163 }
 0x318   :  { %v317_v6 = vmul.f32 0.5, %v1164_v2 }
 0x319   :  { %v280_v3 = vadd.f32 0.5, %v279_v1 }
 0x31a   :  { %v318_v7 = vadd.f32 0.5, %v317_v6 }
 0x31b   :  { %v281_v4 = vsel %vm1451_vm3, %v1162_v0, %v280_v3 }
 0x31c   :  { %284 = vrot.lane.b32.xlu2 %v281_v4, %s1329_s3  ;;  %v319_v8 = vsel %vm1451_vm3, %v1164_v2, %v318_v7  ;;  %v282_v15 = vmul.f32 0.0, %v281_v4 }
 0x31d   :  { %v320_v19 = vmul.f32 %v319_v8, %v1461_v29  ;;  %v97_v29 = vld [vmem:[#allocation3 + $0x10] sm:$0xff] }
 0x31e   :  { %1110 = vmatmul.msk.f32.gmra.mxu0 %vm108_vm0, %v97_v29 }
 0x324   :  { %322 = vrot.lane.b32.xlu2 %v319_v8, %s1329_s3 }
 0x376   :  { %v285_v10 = vpop.permute.xlu2 %284 }
 0x377   :  { %v287_v12 = vmul.f32 %v285_v10, %v281_v4 }
 0x379   :  { %289 = vrot.lane.b32.xlu0 %v287_v12, %s1330_s16  ;;  %v98_v12 = vld [vmem:[#allocation3 + $0x18] sm:$0xff] }
 0x37a   :  { %1111 = vmatmul.msk.f32.gmra.mxu0 %vm108_vm0, %v98_v12 }
 0x37e   :  { %v323_v13 = vpop.permute.xlu2 %322 }
 0x37f   :  { %v325_v14 = vmul.f32 %v323_v13, %v319_v8 }
 0x381   :  { %327 = vrot.lane.b32.xlu1 %v325_v14, %s1330_s16 }
 0x39b   :  { %v156_v36 = vpop.f32.mrf.mxu0 }
 0x39c   :  { %v157_v37 = vadd.f32 %v1448_v11, %v156_v36 }
 0x3eb   :  { %v290_v16 = vpop.permute.xlu0 %289 }
 0x3ec   :  { %v1513_v18 = vadd.f32 %v290_v16, %v282_v15 }
 0x3ee   :  { %1165 = vtanh.f32 %v1513_v18 }
 0x3f3   :  { %v328_v20 = vpop.permute.xlu1 %327 }
 0x3f4   :  { %v1166_v21 = vpop.eup %1165  ;;  %v1517_v22 = vadd.f32 %v328_v20, %v320_v19 }
 0x3f5   :  { %295 = vrot.lane.b32.xlu2 %v1166_v21, %s1329_s3 }
 0x3f6   :  { %1167 = vtanh.f32 %v1517_v22 }
 0x3fc   :  { %v1168_v23 = vpop.eup %1167 }
 0x3fd   :  { %333 = vrot.lane.b32.xlu0 %v1168_v23, %s1329_s3 }
 0x44f   :  { %v296_v24 = vpop.permute.xlu2 %295 }
 0x450   :  { %v298_v25 = vmul.f32 %v296_v24, %v281_v4 }
 0x452   :  { %v299_v26 = vpack.c.bf16 %v298_v25, %v298_v25 }
 0x454   :  { %358 = vrot.lane.b32.xlu2 %v299_v26, %s1330_s16 }
 0x46f   :  { %v334_v27 = vpop.permute.xlu0 %333 }
 0x470   :  { %v336_v28 = vmul.f32 %v334_v27, %v319_v8 }
 0x472   :  { %v337_v30 = vpack.c.bf16 %v336_v28, %v336_v28 }
 0x474   :  { %339 = vrot.lane.b32.xlu1 %v337_v30, %s1330_s16 }
 0x4ae   :  { %v359_v31 = vpop.permute.xlu2 %358 }
 0x4af   :  { %1119 = vmatmul.msk.bf16.vlgmr.msrb.gmra.mxu3 %vm201_vm4, %v359_v31 }
 0x4b0   :  { %571 = vmatpush.bf16.msrb.mxu3 %v1465_v34 }
 0x4b4   :  { %572 = vmatpush.bf16.msrb.mxu3 %v1470_v42 }
 0x4e6   :  { %v340_v32 = vpop.permute.xlu1 %339 }
 0x4e7   :  { %1118 = vmatmul.msk.bf16.vlgmr.msrb.gmra.mxu2 %vm201_vm4, %v340_v32  ;;  %1120 = vmatmul.msk.bf16.vlgmr.msra.gmra.mxu1 %vm201_vm4, %v340_v32 }
 0x4e8   :  { %552 = vmatpush.bf16.msrb.mxu2 %v1467_v38  ;;  %653 = vmatpush.bf16.msra.mxu1 %v1467_v38 }
 0x4ec   :  { %553 = vmatpush.bf16.msrb.mxu2 %v1474_v43  ;;  %654 = vmatpush.bf16.msra.mxu1 %v1474_v43 }
 0x532   :  { %v372_v33 = vpop.f32.mrf.mxu3 }
 0x53a   :  { %v374_v35 = vpop.f32.mrf.mxu3 }
 0x564   :  { %v410_v39 = vpop.f32.mrf.mxu1 }
 0x565   :  { %v414_v40 = vadd.f32 %v410_v39, %v157_v37 }
 0x567   :  { %v415_v41 = vmul.f32 0.5, %v414_v40 }
 0x569   :  { %v416_v44 = vsel %vm1451_vm3, %v414_v40, %v415_v41 }
 0x56a   :  { %1169 = vtanh.f32 %v416_v44  ;;  %v353_v45 = vpop.f32.mrf.mxu2 }
 0x56b   :  { %v373_v46 = vadd.f32 %v372_v33, %v353_v45 }
 0x56c   :  { %v412_v47 = vpop.f32.mrf.mxu1 }
 0x56d   :  { %v376_v48 = vadd.f32 %v1498_v54, %v373_v46 }
 0x56f   :  { %v377_v49 = vmul.f32 0.5, %v376_v48 }
 0x570   :  { %v1170_v50 = vpop.eup %1169 }
 0x571   :  { %v378_v51 = vsel %vm1451_vm3, %v376_v48, %v377_v49  ;;  %v418_v52 = vmul.f32 0.5, %v1170_v50 }
 0x572   :  { %1171 = vtanh.f32 %v378_v51  ;;  %v355_v53 = vpop.f32.mrf.mxu2 }
 0x573   :  { %v419_v55 = vadd.f32 0.5, %v418_v52 }
 0x575   :  { %v420_v56 = vsel %vm1451_vm3, %v1170_v50, %v419_v55 }
 0x576   :  { %423 = vrot.lane.b32.xlu1 %v420_v56, %s1329_s3  ;;  %v421_v6 = vmul.f32 %v420_v56, %v1517_v22  ;;  %v159_v22 = vpop.f32.mrf.mxu0 }
 0x577   :  { %v160_v23 = vadd.f32 %v1448_v11, %v159_v22 }
 0x578   :  { %v1172_v57 = vpop.eup %1171 }
 0x579   :  { %v380_v58 = vmul.f32 0.5, %v1172_v57 }
 0x57b   :  { %v381_v59 = vadd.f32 0.5, %v380_v58 }
 0x57d   :  { %v382_v60 = vsel %vm1451_vm3, %v1172_v57, %v381_v59 }
 0x57e   :  { %385 = vrot.lane.b32.xlu0 %v382_v60, %s1329_s3  ;;  %v383_v1 = vmul.f32 %v382_v60, %v1513_v18 }
 0x5e8   :  { %v424_v61 = vpop.permute.xlu1 %423 }
 0x5e9   :  { %v426_v62 = vmul.f32 %v424_v61, %v420_v56 }
 0x5eb   :  { %428 = vrot.lane.b32.xlu0 %v426_v62, %s1330_s16  ;;  %v99_v62 = vld [vmem:[#allocation3 + $0x20] sm:$0xff] }
 0x5ec   :  { %1112 = vmatmul.msk.f32.gmra.mxu0 %vm108_vm0, %v99_v62 }
 0x5f0   :  { %v386_v63 = vpop.permute.xlu0 %385 }
 0x5f1   :  { %v388_v0 = vmul.f32 %v386_v63, %v382_v60  ;;  %v100_v63 = vld [vmem:[#allocation3 + $0x28] sm:$0xff] }
 0x5f3   :  { %390 = vrot.lane.b32.xlu2 %v388_v0, %s1330_s16 }
 0x5f4   :  { %1113 = vmatmul.msk.f32.gmra.mxu0 %vm108_vm0, %v100_v63 }
 0x64d   :  { %v391_v2 = vpop.permute.xlu2 %390 }
 0x64e   :  { %v1549_v3 = vadd.f32 %v391_v2, %v383_v1 }
 0x650   :  { %1173 = vtanh.f32 %v1549_v3 }
 0x656   :  { %v1174_v4 = vpop.eup %1173 }
 0x657   :  { %396 = vrot.lane.b32.xlu1 %v1174_v4, %s1329_s3  ;;  %v101_v4 = vld [vmem:[#allocation3 + $0x30] sm:$0xff] }
 0x658   :  { %1114 = vmatmul.msk.f32.gmra.mxu0 %vm108_vm0, %v101_v4 }
 0x65d   :  { %v429_v7 = vpop.permute.xlu0 %428 }
 0x65e   :  { %v431_v8 = vadd.f32 %v429_v7, %v421_v6 }
 0x660   :  { %1175 = vtanh.f32 %v431_v8 }
 0x666   :  { %v1176_v10 = vpop.eup %1175 }
 0x667   :  { %434 = vrot.lane.b32.xlu2 %v1176_v10, %s1329_s3 }
 0x6c1   :  { %v435_v13 = vpop.permute.xlu2 %434 }
 0x6c2   :  { %v437_v14 = vmul.f32 %v435_v13, %v420_v56  ;;  %v162_v13 = vpop.f32.mrf.mxu0 }
 0x6c4   :  { %v438_v15 = vpack.c.bf16 %v437_v14, %v437_v14 }
 0x6c6   :  { %440 = vrot.lane.b32.xlu0 %v438_v15, %s1330_s16 }
 0x6c9   :  { %v397_v16 = vpop.permute.xlu1 %396 }
 0x6ca   :  { %v399_v18 = vmul.f32 %v397_v16, %v382_v60  ;;  %v1605_v14 = vpop.f32.mrf.mxu0 }
 0x6cc   :  { %v400_v19 = vpack.c.bf16 %v399_v18, %v399_v18  ;;  %v163_v18 = vadd.f32 %v1448_v11, %v162_v13 }
 0x6ce   :  { %459 = vrot.lane.b32.xlu1 %v400_v19, %s1330_s16 }
 0x6d5   :  { %v1607_v15 = vpop.f32.mrf.mxu0 }
 0x738   :  { %v441_v20 = vpop.permute.xlu0 %440 }
 0x739   :  { %1121 = vmatmul.msk.bf16.vlgmr.msra.gmra.mxu2 %vm201_vm4, %v441_v20  ;;  %1123 = vmatmul.msk.bf16.vlgmr.msrb.gmra.mxu1 %vm201_vm4, %v441_v20 }
 0x73a   :  { %672 = vmatpush.bf16.msra.mxu2 %v1465_v34  ;;  %773 = vmatpush.bf16.msrb.mxu1 %v1465_v34 }
 0x73e   :  { %673 = vmatpush.bf16.msra.mxu2 %v1470_v42  ;;  %774 = vmatpush.bf16.msrb.mxu1 %v1470_v42 }
 0x740   :  { %v460_v21 = vpop.permute.xlu1 %459 }
 0x741   :  { %1122 = vmatmul.msk.bf16.vlgmr.msra.gmra.mxu3 %vm201_vm4, %v460_v21 }
 0x742   :  { %710 = vmatpush.bf16.msra.mxu3 %v1425_v5 }
 0x746   :  { %711 = vmatpush.bf16.msra.mxu3 %v1435_v9 }
 0x7b6   :  { %v511_v24 = vpop.f32.mrf.mxu1 }
 0x7b7   :  { %v515_v25 = vadd.f32 %v511_v24, %v160_v23 }
 0x7b9   :  { %v516_v26 = vmul.f32 0.5, %v515_v25 }
 0x7bb   :  { %v517_v27 = vsel %vm1451_vm3, %v515_v25, %v516_v26 }
 0x7bc   :  { %1177 = vtanh.f32 %v517_v27  ;;  %v454_v28 = vpop.f32.mrf.mxu2 }
 0x7be   :  { %v513_v30 = vpop.f32.mrf.mxu1 }
 0x7c2   :  { %v1178_v29 = vpop.eup %1177 }
 0x7c3   :  { %v519_v31 = vmul.f32 0.5, %v1178_v29 }
 0x7c4   :  { %v456_v32 = vpop.f32.mrf.mxu2  ;;  %v473_v33 = vpop.f32.mrf.mxu3 }
 0x7c5   :  { %v474_v35 = vadd.f32 %v473_v33, %v454_v28  ;;  %v520_v36 = vadd.f32 0.5, %v519_v31 }
 0x7c7   :  { %v477_v37 = vadd.f32 %v1498_v54, %v474_v35  ;;  %v521_v39 = vsel %vm1451_vm3, %v1178_v29, %v520_v36 }
 0x7c8   :  { %524 = vrot.lane.b32.xlu0 %v521_v39, %s1329_s3  ;;  %v522_v53 = vmul.f32 %v521_v39, %v431_v8 }
 0x7c9   :  { %v478_v40 = vmul.f32 0.5, %v477_v37 }
 0x7cb   :  { %v479_v41 = vsel %vm1451_vm3, %v477_v37, %v478_v40 }
 0x7cc   :  { %1179 = vtanh.f32 %v479_v41  ;;  %v475_v44 = vpop.f32.mrf.mxu3 }
 0x7d2   :  { %v1180_v45 = vpop.eup %1179 }
 0x7d3   :  { %v481_v46 = vmul.f32 0.5, %v1180_v45 }
 0x7d5   :  { %v482_v47 = vadd.f32 0.5, %v481_v46 }
 0x7d7   :  { %v483_v48 = vsel %vm1451_vm3, %v1180_v45, %v482_v47 }
 0x7d8   :  { %486 = vrot.lane.b32.xlu2 %v483_v48, %s1329_s3  ;;  %v484_v58 = vmul.f32 %v483_v48, %v1549_v3  ;;  %v102_v3 = vld [vmem:[#allocation3 + $0x38] sm:$0xff] }
 0x7d9   :  { %1115 = vmatmul.msk.f32.gmra.mxu0 %vm108_vm0, %v102_v3 }
 0x832   :  { %v487_v49 = vpop.permute.xlu2 %486 }
 0x833   :  { %v489_v50 = vmul.f32 %v487_v49, %v483_v48 }
 0x835   :  { %491 = vrot.lane.b32.xlu1 %v489_v50, %s1330_s16 }
 0x83a   :  { %v525_v51 = vpop.permute.xlu0 %524 }
 0x83b   :  { %v527_v52 = vmul.f32 %v525_v51, %v521_v39 }
 0x83d   :  { %529 = vrot.lane.b32.xlu2 %v527_v52, %s1330_s16 }
 0x856   :  { %v1609_v16 = vpop.f32.mrf.mxu0 }
 0x897   :  { %v530_v55 = vpop.permute.xlu2 %529 }
 0x898   :  { %v1581_v56 = vadd.f32 %v530_v55, %v522_v53 }
 0x89a   :  { %1181 = vtanh.f32 %v1581_v56 }
 0x8a0   :  { %v1182_v57 = vpop.eup %1181 }
 0x8a1   :  { %535 = vrot.lane.b32.xlu1 %v1182_v57, %s1329_s3 }
 0x8a7   :  { %v492_v59 = vpop.permute.xlu1 %491 }
 0x8a8   :  { %v1586_v60 = vadd.f32 %v492_v59, %v484_v58 }
 0x8aa   :  { %1183 = vtanh.f32 %v1586_v60 }
 0x8b0   :  { %v1184_v61 = vpop.eup %1183 }
 0x8b1   :  { %497 = vrot.lane.b32.xlu0 %v1184_v61, %s1329_s3 }
 0x913   :  { %v536_v0 = vpop.permute.xlu1 %535 }
 0x914   :  { %v538_v1 = vmul.f32 %v536_v0, %v521_v39 }
 0x916   :  { %v539_v2 = vpack.c.bf16 %v538_v1, %v538_v1 }
 0x918   :  { %541 = vrot.lane.b32.xlu2 %v539_v2, %s1330_s16  ;;  %v166_v2 = vadd.f32 %v1448_v11, %v1605_v14 }
 0x923   :  { %v498_v6 = vpop.permute.xlu0 %497 }
 0x924   :  { %v500_v7 = vmul.f32 %v498_v6, %v483_v48 }
 0x926   :  { %v501_v8 = vpack.c.bf16 %v500_v7, %v500_v7 }
 0x928   :  { %560 = vrot.lane.b32.xlu0 %v501_v8, %s1330_s16 }
 0x972   :  { %v542_v10 = vpop.permute.xlu2 %541 }
 0x973   :  { %1124 = vmatmul.msk.bf16.vlgmr.msrb.gmra.mxu2 %vm201_vm4, %v542_v10  ;;  %1126 = vmatmul.msk.bf16.vlgmr.msrb.gmra.mxu0 %vm201_vm4, %v542_v10 }
 0x974   :  { %811 = vmatpush.bf16.msrb.mxu2 %v1425_v5  ;;  %874 = vmatpush.bf16.msrb.mxu0 %v1465_v34 }
 0x978   :  { %812 = vmatpush.bf16.msrb.mxu2 %v1435_v9  ;;  %875 = vmatpush.bf16.msrb.mxu0 %v1470_v42 }
 0x99a   :  { %v561_v12 = vpop.permute.xlu0 %560 }
 0x99b   :  { %1125 = vmatmul.msk.bf16.vlgmr.msrb.gmra.mxu3 %vm201_vm4, %v561_v12 }
 0x99c   :  { %855 = vmatpush.bf16.msrb.mxu3 %v1467_v38 }
 0x9a0   :  { %856 = vmatpush.bf16.msrb.mxu3 %v1474_v43 }
 0x9f0   :  { %v612_v19 = vpop.f32.mrf.mxu0 }
 0x9f1   :  { %v616_v20 = vadd.f32 %v612_v19, %v163_v18 }
 0x9f3   :  { %v617_v21 = vmul.f32 0.5, %v616_v20 }
 0x9f5   :  { %v618_v22 = vsel %vm1451_vm3, %v616_v20, %v617_v21 }
 0x9f6   :  { %1185 = vtanh.f32 %v618_v22  ;;  %v555_v23 = vpop.f32.mrf.mxu2 }
 0x9f8   :  { %v614_v24 = vpop.f32.mrf.mxu0 }
 0x9fc   :  { %v1186_v25 = vpop.eup %1185 }
 0x9fd   :  { %v620_v26 = vmul.f32 0.5, %v1186_v25 }
 0x9fe   :  { %v557_v27 = vpop.f32.mrf.mxu2 }
 0x9ff   :  { %v621_v28 = vadd.f32 0.5, %v620_v26 }
 0xa01   :  { %v622_v30 = vsel %vm1451_vm3, %v1186_v25, %v621_v28 }
 0xa02   :  { %625 = vrot.lane.b32.xlu1 %v622_v30, %s1329_s3  ;;  %v623_v48 = vmul.f32 %v622_v30, %v1581_v56 }
 0xa1e   :  { %v574_v29 = vpop.f32.mrf.mxu3 }
 0xa1f   :  { %v575_v31 = vadd.f32 %v574_v29, %v555_v23 }
 0xa21   :  { %v578_v32 = vadd.f32 %v1498_v54, %v575_v31 }
 0xa23   :  { %v579_v33 = vmul.f32 0.5, %v578_v32 }
 0xa25   :  { %v580_v35 = vsel %vm1451_vm3, %v578_v32, %v579_v33 }
 0xa26   :  { %1187 = vtanh.f32 %v580_v35  ;;  %v576_v36 = vpop.f32.mrf.mxu3 }
 0xa2c   :  { %v1188_v37 = vpop.eup %1187 }
 0xa2d   :  { %v582_v39 = vmul.f32 0.5, %v1188_v37 }
 0xa2f   :  { %v583_v40 = vadd.f32 0.5, %v582_v39 }
 0xa31   :  { %v584_v41 = vsel %vm1451_vm3, %v1188_v37, %v583_v40 }
 0xa32   :  { %587 = vrot.lane.b32.xlu2 %v584_v41, %s1329_s3  ;;  %v585_v52 = vmul.f32 %v584_v41, %v1586_v60 }
 0xa74   :  { %v626_v44 = vpop.permute.xlu1 %625 }
 0xa75   :  { %v628_v45 = vmul.f32 %v626_v44, %v622_v30 }
 0xa77   :  { %630 = vrot.lane.b32.xlu0 %v628_v45, %s1330_s16 }
 0xa8c   :  { %v588_v46 = vpop.permute.xlu2 %587 }
 0xa8d   :  { %v590_v47 = vmul.f32 %v588_v46, %v584_v41 }
 0xa8f   :  { %592 = vrot.lane.b32.xlu1 %v590_v47, %s1330_s16 }
 0xae9   :  { %v631_v49 = vpop.permute.xlu0 %630 }
 0xaea   :  { %v633_v50 = vadd.f32 %v631_v49, %v623_v48  ;;  %v169_v48 = vadd.f32 %v1448_v11, %v1607_v15 }
 0xaec   :  { %1189 = vtanh.f32 %v633_v50 }
 0xaf2   :  { %v1190_v51 = vpop.eup %1189 }
 0xaf3   :  { %636 = vrot.lane.b32.xlu2 %v1190_v51, %s1329_s3 }
 0xb01   :  { %v593_v53 = vpop.permute.xlu1 %592 }
 0xb02   :  { %v595_v55 = vadd.f32 %v593_v53, %v585_v52 }
 0xb04   :  { %1191 = vtanh.f32 %v595_v55 }
 0xb0a   :  { %v1192_v57 = vpop.eup %1191 }
 0xb0b   :  { %598 = vrot.lane.b32.xlu0 %v1192_v57, %s1329_s3 }
 0xb4d   :  { %v637_v58 = vpop.permute.xlu2 %636 }
 0xb4e   :  { %v639_v59 = vmul.f32 %v637_v58, %v622_v30 }
 0xb50   :  { %v640_v61 = vpack.c.bf16 %v639_v59, %v639_v59 }
 0xb52   :  { %642 = vrot.lane.b32.xlu1 %v640_v61, %s1330_s16 }
 0xb7d   :  { %v599_v56 = vpop.permute.xlu0 %598 }
 0xb7e   :  { %v601_v62 = vmul.f32 %v599_v56, %v584_v41 }
 0xb80   :  { %v602_v63 = vpack.c.bf16 %v601_v62, %v601_v62 }
 0xb82   :  { %661 = vrot.lane.b32.xlu2 %v602_v63, %s1330_s16 }
 0xbc4   :  { %v643_v0 = vpop.permute.xlu1 %642 }
 0xbc5   :  { %1127 = vmatmul.msk.bf16.vlgmr.msra.gmra.mxu1 %vm201_vm4, %v643_v0  ;;  %1129 = vmatmul.msk.bf16.vlgmr.msra.gmra.mxu3 %vm201_vm4, %v643_v0 }
 0xbc6   :  { %912 = vmatpush.bf16.msra.mxu1 %v1425_v5  ;;  %975 = vmatpush.bf16.msra.mxu3 %v1465_v34 }
 0xbca   :  { %913 = vmatpush.bf16.msra.mxu1 %v1435_v9  ;;  %976 = vmatpush.bf16.msra.mxu3 %v1470_v42 }
 0xbdc   :  { %v662_v60 = vpop.permute.xlu2 %661 }
 0xbdd   :  { %1128 = vmatmul.msk.bf16.vlgmr.msra.gmra.mxu2 %vm201_vm4, %v662_v60 }
 0xbde   :  { %956 = vmatpush.bf16.msra.mxu2 %v1467_v38 }
 0xbe2   :  { %957 = vmatpush.bf16.msra.mxu2 %v1474_v43 }
 0xc42   :  { %v656_v1 = vpop.f32.mrf.mxu1 }
 0xc48   :  { %v713_v4 = vpop.f32.mrf.mxu3 }
 0xc49   :  { %v717_v3 = vadd.f32 %v713_v4, %v166_v2 }
 0xc4a   :  { %v658_v5 = vpop.f32.mrf.mxu1 }
 0xc4b   :  { %v718_v6 = vmul.f32 0.5, %v717_v3 }
 0xc4d   :  { %v719_v9 = vsel %vm1451_vm3, %v717_v3, %v718_v6 }
 0xc4e   :  { %1193 = vtanh.f32 %v719_v9 }
 0xc50   :  { %v715_v34 = vpop.f32.mrf.mxu3 }
 0xc54   :  { %v1194_v42 = vpop.eup %1193 }
 0xc55   :  { %v721_v7 = vmul.f32 0.5, %v1194_v42 }
 0xc57   :  { %v722_v8 = vadd.f32 0.5, %v721_v7 }
 0xc59   :  { %v723_v38 = vsel %vm1451_vm3, %v1194_v42, %v722_v8 }
 0xc5a   :  { %726 = vrot.lane.b32.xlu0 %v723_v38, %s1329_s3  ;;  %v724_v27 = vmul.f32 %v723_v38, %v633_v50 }
 0xc60   :  { %v675_v43 = vpop.f32.mrf.mxu2 }
 0xc61   :  { %v676_v10 = vadd.f32 %v675_v43, %v656_v1 }
 0xc63   :  { %v679_v12 = vadd.f32 %v1498_v54, %v676_v10 }
 0xc65   :  { %v680_v13 = vmul.f32 0.5, %v679_v12 }
 0xc67   :  { %v681_v14 = vsel %vm1451_vm3, %v679_v12, %v680_v13 }
 0xc68   :  { %1195 = vtanh.f32 %v681_v14  ;;  %v677_v18 = vpop.f32.mrf.mxu2 }
 0xc6e   :  { %v1196_v19 = vpop.eup %1195 }
 0xc6f   :  { %v683_v20 = vmul.f32 0.5, %v1196_v19 }
 0xc71   :  { %v684_v21 = vadd.f32 0.5, %v683_v20 }
 0xc73   :  { %v685_v22 = vsel %vm1451_vm3, %v1196_v19, %v684_v21 }
 0xc74   :  { %688 = vrot.lane.b32.xlu1 %v685_v22, %s1329_s3  ;;  %v686_v31 = vmul.f32 %v685_v22, %v595_v55 }
 0xccc   :  { %v727_v23 = vpop.permute.xlu0 %726 }
 0xccd   :  { %v729_v24 = vmul.f32 %v727_v23, %v723_v38 }
 0xccf   :  { %731 = vrot.lane.b32.xlu2 %v729_v24, %s1330_s16 }
 0xce6   :  { %v689_v25 = vpop.permute.xlu1 %688 }
 0xce7   :  { %v691_v26 = vmul.f32 %v689_v25, %v685_v22  ;;  %v172_v25 = vadd.f32 %v1448_v11, %v1609_v16 }
 0xce9   :  { %693 = vrot.lane.b32.xlu0 %v691_v26, %s1330_s16 }
 0xd29   :  { %v732_v28 = vpop.permute.xlu2 %731 }
 0xd2a   :  { %v734_v30 = vadd.f32 %v732_v28, %v724_v27 }
 0xd2c   :  { %1197 = vtanh.f32 %v734_v30 }
 0xd32   :  { %v1198_v29 = vpop.eup %1197 }
 0xd33   :  { %737 = vrot.lane.b32.xlu1 %v1198_v29, %s1329_s3 }
 0xd5b   :  { %v694_v32 = vpop.permute.xlu0 %693 }
 0xd5c   :  { %v696_v33 = vadd.f32 %v694_v32, %v686_v31 }
 0xd5e   :  { %1199 = vtanh.f32 %v696_v33 }
 0xd64   :  { %v1200_v35 = vpop.eup %1199 }
 0xd65   :  { %699 = vrot.lane.b32.xlu2 %v1200_v35, %s1329_s3 }
 0xda5   :  { %v738_v36 = vpop.permute.xlu1 %737 }
 0xda6   :  { %v740_v37 = vmul.f32 %v738_v36, %v723_v38 }
 0xda8   :  { %v741_v39 = vpack.c.bf16 %v740_v37, %v740_v37 }
 0xdaa   :  { %743 = vrot.lane.b32.xlu0 %v741_v39, %s1330_s16 }
 0xdbf   :  { %v700_v40 = vpop.permute.xlu2 %699 }
 0xdc0   :  { %v702_v41 = vmul.f32 %v700_v40, %v685_v22 }
 0xdc2   :  { %v703_v44 = vpack.c.bf16 %v702_v41, %v702_v41 }
 0xdc4   :  { %762 = vrot.lane.b32.xlu1 %v703_v44, %s1330_s16 }
 0xe1c   :  { %v744_v45 = vpop.permute.xlu0 %743 }
 0xe1d   :  { %1130 = vmatmul.msk.bf16.vlgmr.msra.gmra.mxu0 %vm201_vm4, %v744_v45  ;;  %1132 = vmatmul.msk.bf16.vlgmr.msrb.gmra.mxu2 %vm201_vm4, %v744_v45 }
 0xe36   :  { %v763_v46 = vpop.permute.xlu1 %762 }
 0xe37   :  { %1131 = vmatmul.msk.bf16.vlgmr.msrb.gmra.mxu1 %vm201_vm4, %v763_v46 }
 0xe9a   :  { %v757_v47 = vpop.f32.mrf.mxu0 }
 0xea0   :  { %v814_v49 = vpop.f32.mrf.mxu2 }
 0xea1   :  { %v818_v50 = vadd.f32 %v814_v49, %v169_v48 }
 0xea2   :  { %v759_v51 = vpop.f32.mrf.mxu0 }
 0xea3   :  { %v819_v52 = vmul.f32 0.5, %v818_v50 }
 0xea5   :  { %v820_v53 = vsel %vm1451_vm3, %v818_v50, %v819_v52 }
 0xea6   :  { %1201 = vtanh.f32 %v820_v53 }
 0xea8   :  { %v816_v55 = vpop.f32.mrf.mxu2 }
 0xeac   :  { %v1202_v57 = vpop.eup %1201 }
 0xead   :  { %v822_v58 = vmul.f32 0.5, %v1202_v57 }
 0xeaf   :  { %v823_v59 = vadd.f32 0.5, %v822_v58 }
 0xeb1   :  { %v824_v61 = vsel %vm1451_vm3, %v1202_v57, %v823_v59 }
 0xeb2   :  { %827 = vrot.lane.b32.xlu2 %v824_v61, %s1329_s3  ;;  %v825_v42 = vmul.f32 %v824_v61, %v734_v30 }
 0xeb4   :  { %v776_v56 = vpop.f32.mrf.mxu1 }
 0xeb5   :  { %v777_v62 = vadd.f32 %v776_v56, %v757_v47 }
 0xeb7   :  { %v780_v15 = vadd.f32 %v1498_v54, %v777_v62 }
 0xeb9   :  { %v781_v63 = vmul.f32 0.5, %v780_v15 }
 0xebb   :  { %v782_v0 = vsel %vm1451_vm3, %v780_v15, %v781_v63 }
 0xebc   :  { %1203 = vtanh.f32 %v782_v0  ;;  %v778_v60 = vpop.f32.mrf.mxu1 }
 0xec2   :  { %v1204_v1 = vpop.eup %1203 }
 0xec3   :  { %v784_v2 = vmul.f32 0.5, %v1204_v1 }
 0xec5   :  { %v785_v4 = vadd.f32 0.5, %v784_v2 }
 0xec7   :  { %v786_v3 = vsel %vm1451_vm3, %v1204_v1, %v785_v4 }
 0xec8   :  { %789 = vrot.lane.b32.xlu0 %v786_v3, %s1329_s3  ;;  %v787_v43 = vmul.f32 %v786_v3, %v696_v33 }
 0xf0c   :  { %v828_v5 = vpop.permute.xlu2 %827 }
 0xf0d   :  { %v830_v6 = vmul.f32 %v828_v5, %v824_v61 }
 0xf0f   :  { %832 = vrot.lane.b32.xlu1 %v830_v6, %s1330_s16 }
 0xf3a   :  { %v790_v9 = vpop.permute.xlu0 %789 }
 0xf3b   :  { %v792_v34 = vmul.f32 %v790_v9, %v786_v3 }
 0xf3d   :  { %794 = vrot.lane.b32.xlu2 %v792_v34, %s1330_s16 }
 0xf81   :  { %v833_v7 = vpop.permute.xlu1 %832 }
 0xf82   :  { %v835_v8 = vadd.f32 %v833_v7, %v825_v42 }
 0xf84   :  { %1205 = vtanh.f32 %v835_v8 }
 0xf8a   :  { %v1206_v38 = vpop.eup %1205 }
 0xf8b   :  { %838 = vrot.lane.b32.xlu0 %v1206_v38, %s1329_s3 }
 0xf97   :  { %v795_v10 = vpop.permute.xlu2 %794 }
 0xf98   :  { %v797_v12 = vadd.f32 %v795_v10, %v787_v43 }
 0xf9a   :  { %1207 = vtanh.f32 %v797_v12 }
 0xfa0   :  { %v1208_v13 = vpop.eup %1207 }
 0xfa1   :  { %800 = vrot.lane.b32.xlu1 %v1208_v13, %s1329_s3 }
 0xffd   :  { %v839_v14 = vpop.permute.xlu0 %838 }
 0xffe   :  { %v841_v18 = vmul.f32 %v839_v14, %v824_v61 }
0x1000   :  { %v842_v19 = vpack.c.bf16 %v841_v18, %v841_v18 }
0x1002   :  { %844 = vrot.lane.b32.xlu2 %v842_v19, %s1330_s16 }
0x1013   :  { %v801_v20 = vpop.permute.xlu1 %800 }
0x1014   :  { %v803_v21 = vmul.f32 %v801_v20, %v786_v3 }
0x1016   :  { %v804_v22 = vpack.c.bf16 %v803_v21, %v803_v21 }
0x1018   :  { %863 = vrot.lane.b32.xlu0 %v804_v22, %s1330_s16  ;;  %v1009_v22 = vld [vmem:[%s1753_s7 + $0x18] sm:$0xff] }
0x1019   :  { %1031 = vmatpush.msra.mxu0 %v1009_v22 }
0x101b   :  { %1032 = vmatpush.msra.mxu0 %v1008_v17 }
0x105c   :  { %v845_v23 = vpop.permute.xlu2 %844 }
0x105d   :  { %1133 = vmatmul.msk.bf16.vlgmr.msrb.gmra.mxu3 %vm201_vm4, %v845_v23  ;;  %1135 = vmatmul.msk.bf16.vlgmr.msra.gmra.mxu1 %vm201_vm4, %v845_v23  ;;  %v1007_v23 = vld [vmem:[%s1753_s7 + $0x8] sm:$0xff] }
0x105e   :  { %1033 = vmatpush.msra.mxu0 %v1007_v23 }
0x108a   :  { %v864_v24 = vpop.permute.xlu0 %863 }
0x108b   :  { %1134 = vmatmul.msk.bf16.vlgmr.msrb.gmra.mxu0 %vm201_vm4, %v864_v24  ;;  %v1006_v24 = vld [vmem:[%s1753_s7] sm:$0xff] }
0x108c   :  { %1034 = vmatpush.msra.mxu0 %v1006_v24 }
0x10da   :  { %v915_v26 = vpop.f32.mrf.mxu1 }
0x10db   :  { %v919_v27 = vadd.f32 %v915_v26, %v172_v25 }
0x10dd   :  { %v920_v28 = vmul.f32 0.5, %v919_v27 }
0x10df   :  { %v921_v30 = vsel %vm1451_vm3, %v919_v27, %v920_v28  ;;  %v1041_v27 = vld [vmem:[%s1755_s9 + $0x8] sm:$0xff]  ;;  %v1040_v28 = vld [vmem:[%s1755_s9] sm:$0xff] }
0x10e0   :  { %1209 = vtanh.f32 %v921_v30  ;;  %v858_v29 = vpop.f32.mrf.mxu3  ;;  %1064 = vmatpush.msrb.mxu1 %v1041_v27 }
0x10e2   :  { %v917_v31 = vpop.f32.mrf.mxu1  ;;  %1065 = vmatpush.msrb.mxu1 %v1040_v28 }
0x10e6   :  { %v1210_v32 = vpop.eup %1209 }
0x10e7   :  { %v923_v33 = vmul.f32 0.5, %v1210_v32 }
0x10e8   :  { %v860_v35 = vpop.f32.mrf.mxu3 }
0x10e9   :  { %v924_v36 = vadd.f32 0.5, %v923_v33  ;;  %v1154_v35 = vld [vmem:[%s1756_s10] ss:$0 sm:$0xff]  ;;  %s1097_s10 = sshll.u32 %s1759_s13, 4  ;;  %s1098_s10 = int_to_ptr.hbm [resolvable:$true] %s1097_s10 }
0x10eb   :  { %v925_v37 = vsel %vm1451_vm3, %v1210_v32, %v924_v36 }
0x10ec   :  { %928 = vrot.lane.b32.xlu2 %v925_v37, %s1329_s3  ;;  %v926_v53 = vmul.f32 %v925_v37, %v835_v8 }
0x1108   :  { %v877_v39 = vpop.f32.mrf.mxu0 }
0x1109   :  { %v878_v11 = vadd.f32 %v877_v39, %v858_v29  ;;  %v1153_v29 = vld [vmem:[%s1754_s8] ss:$0 sm:$0xff]  ;;  %s1331_s8 = smov [#allocation9]  }
0x110a   :  { %v1155_v39 = vld [vmem:[%s1757_s11] ss:$0 sm:$0xff]  ;;  %s1095_s30 = sshll.u32 %s1331_s8, 4  ;;  %s1096_s30 = int_to_ptr.vmem [resolvable:$true] %s1095_s30 }
0x110b   :  { %v881_v16 = vadd.f32 %v1498_v54, %v878_v11 }
0x110d   :  { %v882_v40 = vmul.f32 0.5, %v881_v16 }
0x110f   :  { %v883_v41 = vsel %vm1451_vm3, %v881_v16, %v882_v40 }
0x1110   :  { %1211 = vtanh.f32 %v883_v41  ;;  %v879_v44 = vpop.f32.mrf.mxu0  ;;  %v1156_v41 = vld [vmem:[#allocation2] ss:$0 sm:$0xff] }
0x1116   :  { %v1212_v45 = vpop.eup %1211 }
0x1117   :  { %v885_v46 = vmul.f32 0.5, %v1212_v45 }
0x1119   :  { %v886_v47 = vadd.f32 0.5, %v885_v46 }
0x111b   :  { %v887_v48 = vsel %vm1451_vm3, %v1212_v45, %v886_v47 }
0x111c   :  { %890 = vrot.lane.b32.xlu1 %v887_v48, %s1329_s3  ;;  %v888_v59 = vmul.f32 %v887_v48, %v797_v12 }
0x1146   :  { %v929_v49 = vpop.permute.xlu2 %928 }
0x1147   :  { %v931_v50 = vmul.f32 %v929_v49, %v925_v37 }
0x1149   :  { %933 = vrot.lane.b32.xlu1 %v931_v50, %s1330_s16 }
0x118e   :  { %v891_v51 = vpop.permute.xlu1 %890 }
0x118f   :  { %v893_v52 = vmul.f32 %v891_v51, %v887_v48 }
0x1191   :  { %895 = vrot.lane.b32.xlu0 %v893_v52, %s1330_s16 }
0x11bb   :  { %v934_v55 = vpop.permute.xlu1 %933 }
0x11bc   :  { %v936_v57 = vadd.f32 %v934_v55, %v926_v53 }
0x11be   :  { %1213 = vtanh.f32 %v936_v57 }
0x11c4   :  { %v1214_v58 = vpop.eup %1213 }
0x11c5   :  { %939 = vrot.lane.b32.xlu0 %v1214_v58, %s1329_s3 }
0x1203   :  { %v896_v61 = vpop.permute.xlu0 %895 }
0x1204   :  { %v898_v56 = vadd.f32 %v896_v61, %v888_v59 }
0x1206   :  { %1215 = vtanh.f32 %v898_v56 }
0x120c   :  { %v1216_v62 = vpop.eup %1215 }
0x120d   :  { %901 = vrot.lane.b32.xlu2 %v1216_v62, %s1329_s3 }
0x1237   :  { %v940_v15 = vpop.permute.xlu0 %939 }
0x1238   :  { %v942_v63 = vmul.f32 %v940_v15, %v925_v37 }
0x123a   :  { %v943_v0 = vpack.c.bf16 %v942_v63, %v942_v63 }
0x123c   :  { %945 = vrot.lane.b32.xlu1 %v943_v0, %s1330_s16 }
0x1267   :  { %v902_v60 = vpop.permute.xlu2 %901 }
0x1268   :  { %v904_v1 = vmul.f32 %v902_v60, %v887_v48 }
0x126a   :  { %v905_v2 = vpack.c.bf16 %v904_v1, %v904_v1 }
0x126c   :  { %964 = vrot.lane.b32.xlu2 %v905_v2, %s1330_s16 }
0x12ae   :  { %v946_v4 = vpop.permute.xlu1 %945 }
0x12af   :  { %1136 = vmatmul.msk.bf16.vlgmr.msra.gmra.mxu2 %vm201_vm4, %v946_v4 }
0x12c6   :  { %v965_v3 = vpop.permute.xlu2 %964 }
0x12c7   :  { %1137 = vmatmul.msk.bf16.vlgmr.msra.gmra.mxu3 %vm201_vm4, %v965_v3 }
0x1332   :  { %v959_v5 = vpop.f32.mrf.mxu2 }
0x133a   :  { %v961_v6 = vpop.f32.mrf.mxu2 }
0x134a   :  { %v978_v9 = vpop.f32.mrf.mxu3 }
0x134b   :  { %v979_v34 = vadd.f32 %v978_v9, %v959_v5 }
0x134d   :  { %v982_v42 = vadd.f32 %v1498_v54, %v979_v34 }
0x134f   :  { %v983_v7 = vmul.f32 0.5, %v982_v42 }
0x1351   :  { %v984_v8 = vsel %vm1451_vm3, %v982_v42, %v983_v7 }
0x1352   :  { %1217 = vtanh.f32 %v984_v8  ;;  %v980_v38 = vpop.f32.mrf.mxu3 }
0x1358   :  { %v1218_v43 = vpop.eup %1217 }
0x1359   :  { %v986_v10 = vmul.f32 0.5, %v1218_v43 }
0x135b   :  { %v987_v12 = vadd.f32 0.5, %v986_v10 }
0x135d   :  { %v988_v13 = vsel %vm1451_vm3, %v1218_v43, %v987_v12 }
0x135e   :  { %991 = vrot.lane.b32.xlu0 %v988_v13, %s1329_s3  ;;  %v989_v19 = vmul.f32 %v988_v13, %v898_v56 }
0x13d0   :  { %v992_v14 = vpop.permute.xlu0 %991 }
0x13d1   :  { %v994_v18 = vmul.f32 %v992_v14, %v988_v13 }
0x13d3   :  { %996 = vrot.lane.b32.xlu1 %v994_v18, %s1330_s16 }
0x1445   :  { %v997_v54 = vpop.permute.xlu1 %996 }
0x1446   :  { %v999_v20 = vadd.f32 %v997_v54, %v989_v19 }
0x1448   :  { %1219 = vtanh.f32 %v999_v20 }
0x144e   :  { %v1220_v21 = vpop.eup %1219 }
0x144f   :  { %1002 = vrot.lane.b32.xlu2 %v1220_v21, %s1329_s3 }
0x14a9   :  { %v1003_v25 = vpop.permute.xlu2 %1002 }
0x14aa   :  { %v1005_v26 = vmul.f32 %v1003_v25, %v988_v13 }
0x14ac   :  { %1015 = vrot.lane.b32.xlu0 %v1005_v26, %s1330_s16 }
0x151e   :  { %v1016_v30 = vpop.permute.xlu0 %1015 }
0x151f   :  { %1138 = vmatmul.msk.f32.vlgmr.msra.gmra.mxu0 %vm201_vm4, %v1016_v30 }
0x159c   :  { %v1036_v31 = vpop.f32.mrf.mxu0 }
0x159d   :  { %v1037_v32 = vadd.f32 %v1153_v29, %v1036_v31 }
0x159f   :  { %v1039_v33 = vmax.f32 %v1037_v32, 0.0 }
0x15a1   :  { %1139 = vmatmul.msk.f32.vlgmr.msrb.gmra.mxu1 %vm1046_vm5, %v1039_v33 }
0x161e   :  { %v1067_v36 = vpop.f32.mrf.mxu1 }
0x161f   :  { %v1068_v37 = vadd.f32 %v1154_v35, %v1067_v36 }
0x1621   :  { %v1070_v11 = vmax.f32 %v1068_v37, 0.0 }
0x1623   :  { %v1075_v16 = vmul.f32 %v1155_v39, %v1070_v11 }
0x1625   :  { %v1076_v40 = vsel %vm108_vm0, %v1075_v16, 0.0 }
0x1626   :  { %1077 = vadd.xlane.f32.xlu1 %v1076_v40 }
0x1699   :  { %v1078_v44 = vpop.xlane.xlu1 %1077 }
0x169a   :  { %v1083_v45 = vadd.f32 %v1156_v41, %v1078_v44 }
0x169c   :  { %1086 = vperm.xlu2 %1149, %v1083_v45  }
0x16f6   :  { %v1087_v46 = vpop.permute.xlu2 %1086 }
0x16f7   :  { %1089 = vst [vmem:[#allocation9] sm:$0xff] %v1087_v46 }
0x16f8   :  { %1100 = dma.vmem_to_hbm [thread:$0]  %s1096_s30, 128, %s1098_s10, [#allocation5]  }
0x16f9   :  { %1321 = dma.done.wait [#allocation5], 128  }
0x16fa   :  { %1322 = vsyncadd [#allocation5], 4294967168 }
0x16fb   :  { %1105 = vsyncpa [#allocation4], 1 }
0x16fc   :  { %1106 = vsyncpa [#allocation7], 1 }
0x16fd   :  { %1107 = vsyncpa [#allocation5], 1 }

</bundles_post_ra>
